<compile_context>
chip_gen: v7x
topology: tpu7x:2x2x1
jax: 0.10.0
libtpu: 0.0.40
codegen_flags: <defaults>
</compile_context>

<pallas_src>
import functools

import jax
import jax.numpy as jnp
import numpy as np
from jax.experimental import pallas as pl
from jax.experimental.pallas import tpu as pltpu


def _round_up(x: int, m: int) -> int:
    return -(-x // m) * m


# -----------------------------------------------------------------------------
# Kernel factory
# -----------------------------------------------------------------------------
def _make_kernel(*, num_lstm_layers: int, num_fc_layers: int, hidden: int,
                 fused: bool):
    H = hidden
    G = 4 * H
    L = num_lstm_layers
    use_scratch = (not fused) and L > 1

    def lstm_cell(gates, c, g_mask):
        # One EUP pass: sigmoid(z) = 0.5*(tanh(z/2)+1); true tanh on the g block.
        z = jnp.where(g_mask, gates, 0.5 * gates)
        tz = jnp.tanh(z)
        act = jnp.where(g_mask, tz, 0.5 * (tz + 1.0))       # [f | i | o | g]
        # XLU rolls align the gates.  Order [f,i,o,g] makes this roll-direction
        # independent: the 2H roll always lands on o, and the +/-H rolls land on
        # {i, g}, whose product i*g is symmetric.
        ig_a = pltpu.roll(act, shift=H, axis=1)
        ig_b = pltpu.roll(act, shift=3 * H, axis=1)
        o_a = pltpu.roll(act, shift=2 * H, axis=1)
        c = act * c + ig_a * ig_b                            # lanes [0,H) valid
        h = o_a * jnp.tanh(c)                                # lanes [0,H) valid
        return h, c

    def head(feat, fcs, w_out_ref, b_out_ref, out_ref):
        for (w_ref, b_ref) in fcs:
            feat = jnp.maximum(
                jnp.dot(feat, w_ref[...], preferred_element_type=jnp.float32)
                + b_ref[...], 0.0)
        out_ref[...] = (
            jnp.dot(feat, w_out_ref[...], preferred_element_type=jnp.float32)
            + b_out_ref[...])

    if fused:
        # --------------------- wavefront-fused recurrence ---------------------
        def kernel(*refs):
            idx = 0
            x_ref = refs[idx]; idx += 1
            w_ih0_ref, b0_ref, w_big_ref = refs[idx], refs[idx + 1], refs[idx + 2]
            idx += 3
            b_rest_ref = None
            if L > 1:
                b_rest_ref = refs[idx]; idx += 1
            fcs = []
            for _ in range(num_fc_layers):
                fcs.append((refs[idx], refs[idx + 1])); idx += 2
            w_out_ref, b_out_ref = refs[idx], refs[idx + 1]; idx += 2
            out_ref = refs[idx]

            x = x_ref[...]                                   # (T, BB, D_in)
            T, BB, _ = x.shape

            lanes = jax.lax.broadcasted_iota(jnp.int32, (BB, G), 1)
            g_mask = lanes >= 3 * H                          # g block = lanes [3H,4H)

            # Hoisted layer-0 input projection: one matmul for all T steps.
            gx0 = jnp.dot(x.reshape(T * BB, x.shape[-1]), w_ih0_ref[...],
                          preferred_element_type=jnp.float32) + b0_ref[...]

            w_big = w_big_ref[...]                           # (L*G, L*G)
            b_rest = b_rest_ref[...] if L > 1 else None      # (1, (L-1)*G)

            h = [jnp.zeros((BB, G), jnp.float32) for _ in range(L)]
            c = [jnp.zeros((BB, G), jnp.float32) for _ in range(L)]

            # Static wavefront: fused step s advances layer l at time step s - l.
            for s in range(T + L - 1):
                if s == 0:
                    # All states are still zero -> recurrent term vanishes.
                    h[0], c[0] = lstm_cell(gx0[:BB, :], c[0], g_mask)
                    continue
                hc = jnp.concatenate(h, axis=1)              # (BB, L*G), lane-aligned
                gf = jnp.dot(hc, w_big, preferred_element_type=jnp.float32)
                for l in range(L):
                    t_l = s - l
                    if not (0 <= t_l < T):
                        continue
                    g_l = gf[:, l * G:(l + 1) * G]           # vreg-boundary slice
                    if l == 0:
                        g_l = g_l + gx0[t_l * BB:(t_l + 1) * BB, :]
                    else:
                        g_l = g_l + b_rest[:, (l - 1) * G:l * G]
                    h[l], c[l] = lstm_cell(g_l, c[l], g_mask)

            head(h[L - 1], fcs, w_out_ref, b_out_ref, out_ref)

        return kernel

    # ------------------- layer-sequential recurrence (large BB) -------------------
    def kernel(*refs):
        idx = 0
        x_ref = refs[idx]; idx += 1
        lstm = []
        for _ in range(L):
            lstm.append((refs[idx], refs[idx + 1], refs[idx + 2])); idx += 3
        fcs = []
        for _ in range(num_fc_layers):
            fcs.append((refs[idx], refs[idx + 1])); idx += 2
        w_out_ref, b_out_ref = refs[idx], refs[idx + 1]; idx += 2
        out_ref = refs[idx]; idx += 1
        seq_ref = refs[idx] if use_scratch else None         # VMEM (T*BB, G)

        x = x_ref[...]                                       # (T, BB, D_in)
        T, BB, _ = x.shape
        lanes = jax.lax.broadcasted_iota(jnp.int32, (BB, G), 1)
        g_mask = lanes >= 3 * H

        layer_in = x.reshape(T * BB, x.shape[-1])
        h = None
        for li, (w_ih_ref, w_hh_ref, b_ref) in enumerate(lstm):
            # Hoisted per-layer input projection.
            gates_x = jnp.dot(layer_in, w_ih_ref[...],
                              preferred_element_type=jnp.float32) + b_ref[...]
            w_hh = w_hh_ref[...]
            h = jnp.zeros((BB, G), jnp.float32)
            c = jnp.zeros((BB, G), jnp.float32)
            last = (li == L - 1)
            for t in range(T):                               # static unroll
                gates = gates_x[t * BB:(t + 1) * BB, :] + jnp.dot(
                    h, w_hh, preferred_element_type=jnp.float32)
                h, c = lstm_cell(gates, c, g_mask)
                if not last:
                    # Write per-step outputs to VMEM scratch -> bounds live ranges,
                    # avoids the concat copy / vreg spills at BB=128.
                    seq_ref[t * BB:(t + 1) * BB, :] = h
            if not last:
                layer_in = seq_ref[...]
        head(h, fcs, w_out_ref, b_out_ref, out_ref)

    return kernel


# -----------------------------------------------------------------------------
# Parameter helpers (gate reorder i,f,g,o -> f,i,o,g; zero-row padding)
# -----------------------------------------------------------------------------
def _perm_gates(w):
    i, f, g, o = jnp.split(w, 4, axis=-1)
    return jnp.concatenate([f, i, o, g], axis=-1)


def _pad_rows(w, rows):
    return jnp.pad(w, ((0, rows - w.shape[0]), (0, 0)))


class BaselineLSTMDynamicModel:
    """JAX/Pallas port of Baseline_LSTM_Dynamic_Model (inference semantics)."""

    def __init__(self, *, vert_img_hgt, time_step, num_lstm_layers,
                 lstm_hidden_units, num_layers, inp_lr_flag, lf_rt_tag,
                 out_use_mid, key):
        self.vert_img_hgt = vert_img_hgt
        self.time_step = time_step
        self.num_lstm_layers = num_lstm_layers
        self.lstm_hidden_units = lstm_hidden_units
        self.num_layers = num_layers
        self.inp_num = 1 if inp_lr_flag in ("left", "right") else 2
        output_num = 1 if lf_rt_tag in ("left", "right") else 2
        self.out_dim = (1 * output_num) if out_use_mid else (vert_img_hgt * output_num)
        self.in_feat = vert_img_hgt * self.inp_num + 1

        H = lstm_hidden_units
        G = 4 * H
        L = num_lstm_layers
        keys = jax.random.split(key, 4 * L + 2 * num_layers + 2)
        k = iter(keys)
        scale = 1.0 / np.sqrt(H)

        # ---- natural-order params (gate order i,f,g,o) used by the reference ----
        self.lstm_params = []
        for layer in range(L):
            d_in = self.in_feat if layer == 0 else H
            w_ih = jax.random.uniform(next(k), (d_in, G), jnp.float32, -scale, scale)
            w_hh = jax.random.uniform(next(k), (H, G), jnp.float32, -scale, scale)
            b_ih = jax.random.uniform(next(k), (1, G), jnp.float32, -scale, scale)
            b_hh = jax.random.uniform(next(k), (1, G), jnp.float32, -scale, scale)
            self.lstm_params.append((w_ih, w_hh, b_ih + b_hh))

        self.fc_params = []
        for _ in range(num_layers):
            w = jax.random.uniform(next(k), (H, H), jnp.float32, -scale, scale)
            b = jax.random.uniform(next(k), (1, H), jnp.float32, -scale, scale)
            self.fc_params.append((w, b))

        self.w_out = jax.random.uniform(next(k), (H, self.out_dim), jnp.float32, -scale, scale)
        self.b_out = jax.random.uniform(next(k), (1, self.out_dim), jnp.float32, -scale, scale)

        # ---------------- kernel-layout params (see invariant in header) ----------------
        # (a) layer-sequential layout: columns [f,i,o,g], rows zero-padded to G.
        self.k_lstm = []
        for layer, (w_ih, w_hh, b) in enumerate(self.lstm_params):
            w_ih_k = _perm_gates(w_ih)
            if layer > 0:
                w_ih_k = _pad_rows(w_ih_k, G)         # consumes the (BB, G) h slab
            w_hh_k = _pad_rows(_perm_gates(w_hh), G)
            self.k_lstm.append((w_ih_k, w_hh_k, _perm_gates(b)))

        # (b) wavefront-fused layout: W_big[l-block rows [0,H)] = [W_hh_l | W_ih_{l+1}].
        self.k_w_ih0 = _perm_gates(self.lstm_params[0][0])    # (D_in, G)
        self.k_b0 = _perm_gates(self.lstm_params[0][2])       # (1, G)
        w_big = jnp.zeros((L * G, L * G), jnp.float32)
        for l in range(L):
            w_big = w_big.at[l * G:l * G + H, l * G:(l + 1) * G].set(
                _perm_gates(self.lstm_params[l][1]))
            if l + 1 < L:
                w_big = w_big.at[l * G:l * G + H, (l + 1) * G:(l + 2) * G].set(
                    _perm_gates(self.lstm_params[l + 1][0]))
        self.k_w_big = w_big
        self.k_b_rest = (jnp.concatenate(
            [_perm_gates(self.lstm_params[l][2]) for l in range(1, L)], axis=1)
            if L > 1 else None)

        # (c) head: zero-pad fc/out weights to 128-lane widths (lane-dense matmuls,
        #     unmasked output stores); padded lanes stay exactly zero through relu.
        FEAT = _round_up(H, 128)
        OUTP = _round_up(self.out_dim, 128)
        self.k_fc = []
        in_rows = G                                   # first consumer eats the h slab
        for (w, b) in self.fc_params:
            wk = jnp.zeros((in_rows, FEAT), jnp.float32).at[:H, :H].set(w)
            bk = jnp.zeros((1, FEAT), jnp.float32).at[:, :H].set(b)
            self.k_fc.append((wk, bk))
            in_rows = FEAT
        self.k_w_out = jnp.zeros((in_rows, OUTP), jnp.float32).at[:H, :self.out_dim].set(self.w_out)
        self.k_b_out = jnp.zeros((1, OUTP), jnp.float32).at[:, :self.out_dim].set(self.b_out)

        # Enforce the zero-row invariant (correctness-critical; see header comment).
        for layer, (w_ih_k, w_hh_k, _) in enumerate(self.k_lstm):
            assert float(jnp.abs(w_hh_k[H:, :]).max()) == 0.0
            if layer > 0:
                assert float(jnp.abs(w_ih_k[H:, :]).max()) == 0.0
        for l in range(L):
            blk = self.k_w_big[l * G:(l + 1) * G, :]
            assert float(jnp.abs(blk[H:, :]).max()) == 0.0
        first_head = self.k_fc[0][0] if self.k_fc else self.k_w_out
        assert float(jnp.abs(first_head[H:, :]).max()) == 0.0

    # ------------------------------ glue -------------------------------------
    def _prepare(self, inputs):
        B = inputs.shape[0]
        T = self.time_step - 1
        reach = inputs[:, -1:]                                   # (B, 1)
        body = inputs[:, :-1].reshape(B, T, self.vert_img_hgt * self.inp_num)
        reach = jnp.broadcast_to(reach.reshape(B, 1, 1), (B, T, 1))
        return jnp.concatenate([body, reach], axis=2)            # (B, T, in_feat)

    # --------------------------- pallas call ----------------------------------
    @functools.partial(jax.jit, static_argnums=0)
    def __call__(self, inputs):
        B = inputs.shape[0]
        T = self.time_step - 1
        D_in = self.in_feat
        H = self.lstm_hidden_units
        G = 4 * H
        L = self.num_lstm_layers

        x = self._prepare(inputs).astype(jnp.float32)            # (B, T, D_in)
        x = jnp.transpose(x, (1, 0, 2))                          # (T, B, D_in) time-major

        # Batch tiling: BB = min(round_up(B, 8), 128); pad batch to a multiple of BB.
        # (No collapse to BB=8 for non-128-multiple batches; grid grows with batch so
        #  v7x's second TensorCore is used via dimension_semantics=("parallel",).)
        B8 = _round_up(max(B, 1), 8)
        BB = min(B8, 128)
        B_pad = _round_up(B8, BB)
        if B_pad != B:
            x = jnp.pad(x, ((0, 0), (0, B_pad - B), (0, 0)))
        grid = (B_pad // BB,)

        # Small-BB (latency-bound) -> wavefront-fuse the LSTM layers.
        fused = BB <= 64

        def wspec(a):
            return pl.BlockSpec(a.shape, lambda i: (0, 0))       # VMEM-resident weight

        flat = [x]
        specs = [pl.BlockSpec((T, BB, D_in), lambda i: (0, i, 0))]
        if fused:
            flat += [self.k_w_ih0, self.k_b0, self.k_w_big]
            specs += [wspec(self.k_w_ih0), wspec(self.k_b0), wspec(self.k_w_big)]
            if L > 1:
                flat += [self.k_b_rest]
                specs += [wspec(self.k_b_rest)]
        else:
            for (w_ih, w_hh, b) in self.k_lstm:
                flat += [w_ih, w_hh, b]
                specs += [wspec(w_ih), wspec(w_hh), wspec(b)]
        for (w, b) in self.k_fc:
            flat += [w, b]
            specs += [wspec(w), wspec(b)]
        flat += [self.k_w_out, self.k_b_out]
        specs += [wspec(self.k_w_out), wspec(self.k_b_out)]

        scratch = []
        if (not fused) and L > 1:
            scratch = [pltpu.VMEM((T * BB, G), jnp.float32)]

        kernel = _make_kernel(num_lstm_layers=L, num_fc_layers=self.num_layers,
                              hidden=H, fused=fused)
        out_pad = self.k_w_out.shape[1]
        out = pl.pallas_call(
            kernel,
            out_shape=jax.ShapeDtypeStruct((B_pad, out_pad), jnp.float32),
            grid=grid,
            in_specs=specs,
            out_specs=pl.BlockSpec((BB, out_pad), lambda i: (i, 0)),
            scratch_shapes=scratch,
            compiler_params=pltpu.CompilerParams(
                dimension_semantics=("parallel",)),
        )(*flat)
        return out[:B, :self.out_dim]

    # --------------------- pure-JAX/numpy reference ---------------------------
    def reference(self, inputs):
        x = np.asarray(self._prepare(inputs), dtype=np.float32)
        B, T, _ = x.shape
        H = self.lstm_hidden_units
        sig = lambda z: 1.0 / (1.0 + np.exp(-z))
        seq = [x[:, t, :] for t in range(T)]
        h = None
        for (w_ih, w_hh, b) in self.lstm_params:
            w_ih = np.asarray(w_ih); w_hh = np.asarray(w_hh); b = np.asarray(b)
            h = np.zeros((B, H), np.float32)
            c = np.zeros((B, H), np.float32)
            new_seq = []
            for t in range(T):
                g = seq[t] @ w_ih + h @ w_hh + b
                i_g, f_g = sig(g[:, :H]), sig(g[:, H:2 * H])
                g_g, o_g = np.tanh(g[:, 2 * H:3 * H]), sig(g[:, 3 * H:])
                c = f_g * c + i_g * g_g
                h = o_g * np.tanh(c)
                new_seq.append(h)
            seq = new_seq
        feat = h
        for (w, b) in self.fc_params:
            feat = np.maximum(feat @ np.asarray(w) + np.asarray(b), 0.0)
        return feat @ np.asarray(self.w_out) + np.asarray(self.b_out)


if __name__ == "__main__":
    key = jax.random.PRNGKey(0)
    k_param, k_inp = jax.random.split(key)

    vert_img_hgt = 8
    time_step = 8            # sequence length used = time_step - 1 = 7
    num_lstm_layers = 2
    lstm_hidden_units = 32
    num_layers = 1
    batch = 2

    model = BaselineLSTMDynamicModel(
        vert_img_hgt=vert_img_hgt, time_step=time_step,
        num_lstm_layers=num_lstm_layers, lstm_hidden_units=lstm_hidden_units,
        num_layers=num_layers, inp_lr_flag="both", lf_rt_tag="both",
        out_use_mid=False, key=k_param,
    )

    # inputs: (B, (time_step-1) * vert_img_hgt * inp_num + 1)
    in_dim = (time_step - 1) * vert_img_hgt * 2 + 1
    inputs = jax.random.normal(k_inp, (batch, in_dim), dtype=jnp.float32)

    out = model(inputs)
    out = jax.block_until_ready(out)

    ref = model.reference(inputs)
    assert out.shape == (batch, vert_img_hgt * 2), out.shape
    np.testing.assert_allclose(np.asarray(out), ref, rtol=1e-4, atol=1e-4)

    print("KERNEL_OK")
</pallas_src>

<mosaic_0001>
module attributes {stable_mosaic.version = 11 : i64} {
  func.func @kernel(%arg0: i32, %arg1: memref<7x8x17xf32, #tpu.memory_space<vmem>>, %arg2: memref<17x128xf32, #tpu.memory_space<vmem>>, %arg3: memref<1x128xf32, #tpu.memory_space<vmem>>, %arg4: memref<256x256xf32, #tpu.memory_space<vmem>>, %arg5: memref<1x128xf32, #tpu.memory_space<vmem>>, %arg6: memref<128x128xf32, #tpu.memory_space<vmem>>, %arg7: memref<1x128xf32, #tpu.memory_space<vmem>>, %arg8: memref<128x128xf32, #tpu.memory_space<vmem>>, %arg9: memref<1x128xf32, #tpu.memory_space<vmem>>, %arg10: memref<8x128xf32, #tpu.memory_space<vmem>>) attributes {dimension_semantics = [#tpu.dimension_semantics<parallel>], iteration_bounds = array<i64: 1>, scalar_prefetch = 0 : i64, scratch_operands = 0 : i64, tpu.core_type = #tpu.core_type<tc>, window_params = [{transform_indices = @transform_0, window_bounds = array<i64: 7, 8, 17>}, {pipeline_mode = #tpu.pipeline_mode<synchronous>, transform_indices = @transform_1, window_bounds = array<i64: 17, 128>}, {pipeline_mode = #tpu.pipeline_mode<synchronous>, transform_indices = @transform_2, window_bounds = array<i64: 1, 128>}, {pipeline_mode = #tpu.pipeline_mode<synchronous>, transform_indices = @transform_3, window_bounds = array<i64: 256, 256>}, {pipeline_mode = #tpu.pipeline_mode<synchronous>, transform_indices = @transform_4, window_bounds = array<i64: 1, 128>}, {pipeline_mode = #tpu.pipeline_mode<synchronous>, transform_indices = @transform_5, window_bounds = array<i64: 128, 128>}, {pipeline_mode = #tpu.pipeline_mode<synchronous>, transform_indices = @transform_6, window_bounds = array<i64: 1, 128>}, {pipeline_mode = #tpu.pipeline_mode<synchronous>, transform_indices = @transform_7, window_bounds = array<i64: 128, 128>}, {pipeline_mode = #tpu.pipeline_mode<synchronous>, transform_indices = @transform_8, window_bounds = array<i64: 1, 128>}, {transform_indices = @transform_9, window_bounds = array<i64: 8, 128>}]} {
    %c0 = arith.constant 0 : index
    %c0_0 = arith.constant 0 : index
    %c0_1 = arith.constant 0 : index
    %0 = vector.load %arg1[%c0, %c0_0, %c0_1] : memref<7x8x17xf32, #tpu.memory_space<vmem>>, vector<7x8x17xf32>
    %1 = tpu.iota {dimensions = array<i32: 1>} : vector<8x128xi32>
    %c96_i32 = arith.constant 96 : i32
    %2 = vector.broadcast %c96_i32 : i32 to vector<8x128xi32>
    %3 = arith.cmpi sge, %1, %2 : vector<8x128xi32>
    %4 = vector.shape_cast %0 : vector<7x8x17xf32> to vector<56x17xf32>
    %c0_2 = arith.constant 0 : index
    %c0_3 = arith.constant 0 : index
    %5 = vector.load %arg2[%c0_2, %c0_3] : memref<17x128xf32, #tpu.memory_space<vmem>>, vector<17x128xf32>
    %cst = arith.constant dense<0.000000e+00> : vector<56x128xf32>
    %6 = tpu.matmul %4, %5, %cst {dimension_numbers = #tpu.dot_dimension_numbers<[1], [0], [0], [1], [0, 0, 1, 1], [], []>} : vector<56x17xf32>, vector<17x128xf32>, vector<56x128xf32> -> vector<56x128xf32>
    %c0_4 = arith.constant 0 : index
    %c0_5 = arith.constant 0 : index
    %7 = vector.load %arg3[%c0_4, %c0_5] : memref<1x128xf32, #tpu.memory_space<vmem>>, vector<1x128xf32>
    %8 = vector.broadcast %7 : vector<1x128xf32> to vector<56x128xf32>
    %9 = arith.addf %6, %8 : vector<56x128xf32>
    %c0_6 = arith.constant 0 : index
    %c0_7 = arith.constant 0 : index
    %10 = vector.load %arg4[%c0_6, %c0_7] : memref<256x256xf32, #tpu.memory_space<vmem>>, vector<256x256xf32>
    %c0_8 = arith.constant 0 : index
    %c0_9 = arith.constant 0 : index
    %11 = vector.load %arg5[%c0_8, %c0_9] : memref<1x128xf32, #tpu.memory_space<vmem>>, vector<1x128xf32>
    %cst_10 = arith.constant 0.000000e+00 : f32
    %12 = vector.broadcast %cst_10 : f32 to vector<8x128xf32>
    %cst_11 = arith.constant 0.000000e+00 : f32
    %13 = vector.broadcast %cst_11 : f32 to vector<8x128xf32>
    %cst_12 = arith.constant 0.000000e+00 : f32
    %14 = vector.broadcast %cst_12 : f32 to vector<8x128xf32>
    %15 = vector.extract_strided_slice %9 {offsets = [0, 0], sizes = [8, 128], strides = [1, 1]} : vector<56x128xf32> to vector<8x128xf32>
    %cst_13 = arith.constant 5.000000e-01 : f32
    %16 = vector.broadcast %cst_13 : f32 to vector<8x128xf32>
    %17 = arith.mulf %16, %15 : vector<8x128xf32>
    %18 = arith.select %3, %15, %17 : vector<8x128xi1>, vector<8x128xf32>
    %19 = math.tanh %18 : vector<8x128xf32>
    %cst_14 = arith.constant 1.000000e+00 : f32
    %20 = vector.broadcast %cst_14 : f32 to vector<8x128xf32>
    %21 = arith.addf %19, %20 : vector<8x128xf32>
    %cst_15 = arith.constant 5.000000e-01 : f32
    %22 = vector.broadcast %cst_15 : f32 to vector<8x128xf32>
    %23 = arith.mulf %22, %21 : vector<8x128xf32>
    %24 = arith.select %3, %19, %23 : vector<8x128xi1>, vector<8x128xf32>
    %c32_i32 = arith.constant 32 : i32
    %25 = tpu.dynamic_rotate %24 by %c32_i32 dim 1 : vector<8x128xf32>, i32 -> vector<8x128xf32>
    %c96_i32_16 = arith.constant 96 : i32
    %26 = tpu.dynamic_rotate %24 by %c96_i32_16 dim 1 : vector<8x128xf32>, i32 -> vector<8x128xf32>
    %c64_i32 = arith.constant 64 : i32
    %27 = tpu.dynamic_rotate %24 by %c64_i32 dim 1 : vector<8x128xf32>, i32 -> vector<8x128xf32>
    %28 = arith.mulf %24, %13 : vector<8x128xf32>
    %29 = arith.mulf %25, %26 : vector<8x128xf32>
    %30 = arith.addf %28, %29 : vector<8x128xf32>
    %31 = math.tanh %30 : vector<8x128xf32>
    %32 = arith.mulf %27, %31 : vector<8x128xf32>
    %33 = tpu.concatenate %32, %12 in 1 : vector<8x128xf32>, vector<8x128xf32> -> vector<8x256xf32>
    %cst_17 = arith.constant dense<0.000000e+00> : vector<8x256xf32>
    %34 = tpu.matmul %33, %10, %cst_17 {dimension_numbers = #tpu.dot_dimension_numbers<[1], [0], [0], [1], [0, 0, 1, 1], [], []>} : vector<8x256xf32>, vector<256x256xf32>, vector<8x256xf32> -> vector<8x256xf32>
    %35 = vector.extract_strided_slice %34 {offsets = [0, 0], sizes = [8, 128], strides = [1, 1]} : vector<8x256xf32> to vector<8x128xf32>
    %36 = vector.extract_strided_slice %9 {offsets = [8, 0], sizes = [8, 128], strides = [1, 1]} : vector<56x128xf32> to vector<8x128xf32>
    %37 = arith.addf %35, %36 : vector<8x128xf32>
    %cst_18 = arith.constant 5.000000e-01 : f32
    %38 = vector.broadcast %cst_18 : f32 to vector<8x128xf32>
    %39 = arith.mulf %38, %37 : vector<8x128xf32>
    %40 = arith.select %3, %37, %39 : vector<8x128xi1>, vector<8x128xf32>
    %41 = math.tanh %40 : vector<8x128xf32>
    %cst_19 = arith.constant 1.000000e+00 : f32
    %42 = vector.broadcast %cst_19 : f32 to vector<8x128xf32>
    %43 = arith.addf %41, %42 : vector<8x128xf32>
    %cst_20 = arith.constant 5.000000e-01 : f32
    %44 = vector.broadcast %cst_20 : f32 to vector<8x128xf32>
    %45 = arith.mulf %44, %43 : vector<8x128xf32>
    %46 = arith.select %3, %41, %45 : vector<8x128xi1>, vector<8x128xf32>
    %c32_i32_21 = arith.constant 32 : i32
    %47 = tpu.dynamic_rotate %46 by %c32_i32_21 dim 1 : vector<8x128xf32>, i32 -> vector<8x128xf32>
    %c96_i32_22 = arith.constant 96 : i32
    %48 = tpu.dynamic_rotate %46 by %c96_i32_22 dim 1 : vector<8x128xf32>, i32 -> vector<8x128xf32>
    %c64_i32_23 = arith.constant 64 : i32
    %49 = tpu.dynamic_rotate %46 by %c64_i32_23 dim 1 : vector<8x128xf32>, i32 -> vector<8x128xf32>
    %50 = arith.mulf %46, %30 : vector<8x128xf32>
    %51 = arith.mulf %47, %48 : vector<8x128xf32>
    %52 = arith.addf %50, %51 : vector<8x128xf32>
    %53 = math.tanh %52 : vector<8x128xf32>
    %54 = arith.mulf %49, %53 : vector<8x128xf32>
    %55 = vector.extract_strided_slice %34 {offsets = [0, 128], sizes = [8, 128], strides = [1, 1]} : vector<8x256xf32> to vector<8x128xf32>
    %56 = vector.broadcast %11 : vector<1x128xf32> to vector<8x128xf32>
    %57 = arith.addf %55, %56 : vector<8x128xf32>
    %cst_24 = arith.constant 5.000000e-01 : f32
    %58 = vector.broadcast %cst_24 : f32 to vector<8x128xf32>
    %59 = arith.mulf %58, %57 : vector<8x128xf32>
    %60 = arith.select %3, %57, %59 : vector<8x128xi1>, vector<8x128xf32>
    %61 = math.tanh %60 : vector<8x128xf32>
    %cst_25 = arith.constant 1.000000e+00 : f32
    %62 = vector.broadcast %cst_25 : f32 to vector<8x128xf32>
    %63 = arith.addf %61, %62 : vector<8x128xf32>
    %cst_26 = arith.constant 5.000000e-01 : f32
    %64 = vector.broadcast %cst_26 : f32 to vector<8x128xf32>
    %65 = arith.mulf %64, %63 : vector<8x128xf32>
    %66 = arith.select %3, %61, %65 : vector<8x128xi1>, vector<8x128xf32>
    %c32_i32_27 = arith.constant 32 : i32
    %67 = tpu.dynamic_rotate %66 by %c32_i32_27 dim 1 : vector<8x128xf32>, i32 -> vector<8x128xf32>
    %c96_i32_28 = arith.constant 96 : i32
    %68 = tpu.dynamic_rotate %66 by %c96_i32_28 dim 1 : vector<8x128xf32>, i32 -> vector<8x128xf32>
    %c64_i32_29 = arith.constant 64 : i32
    %69 = tpu.dynamic_rotate %66 by %c64_i32_29 dim 1 : vector<8x128xf32>, i32 -> vector<8x128xf32>
    %70 = arith.mulf %66, %14 : vector<8x128xf32>
    %71 = arith.mulf %67, %68 : vector<8x128xf32>
    %72 = arith.addf %70, %71 : vector<8x128xf32>
    %73 = math.tanh %72 : vector<8x128xf32>
    %74 = arith.mulf %69, %73 : vector<8x128xf32>
    %75 = tpu.concatenate %54, %74 in 1 : vector<8x128xf32>, vector<8x128xf32> -> vector<8x256xf32>
    %cst_30 = arith.constant dense<0.000000e+00> : vector<8x256xf32>
    %76 = tpu.matmul %75, %10, %cst_30 {dimension_numbers = #tpu.dot_dimension_numbers<[1], [0], [0], [1], [0, 0, 1, 1], [], []>} : vector<8x256xf32>, vector<256x256xf32>, vector<8x256xf32> -> vector<8x256xf32>
    %77 = vector.extract_strided_slice %76 {offsets = [0, 0], sizes = [8, 128], strides = [1, 1]} : vector<8x256xf32> to vector<8x128xf32>
    %78 = vector.extract_strided_slice %9 {offsets = [16, 0], sizes = [8, 128], strides = [1, 1]} : vector<56x128xf32> to vector<8x128xf32>
    %79 = arith.addf %77, %78 : vector<8x128xf32>
    %cst_31 = arith.constant 5.000000e-01 : f32
    %80 = vector.broadcast %cst_31 : f32 to vector<8x128xf32>
    %81 = arith.mulf %80, %79 : vector<8x128xf32>
    %82 = arith.select %3, %79, %81 : vector<8x128xi1>, vector<8x128xf32>
    %83 = math.tanh %82 : vector<8x128xf32>
    %cst_32 = arith.constant 1.000000e+00 : f32
    %84 = vector.broadcast %cst_32 : f32 to vector<8x128xf32>
    %85 = arith.addf %83, %84 : vector<8x128xf32>
    %cst_33 = arith.constant 5.000000e-01 : f32
    %86 = vector.broadcast %cst_33 : f32 to vector<8x128xf32>
    %87 = arith.mulf %86, %85 : vector<8x128xf32>
    %88 = arith.select %3, %83, %87 : vector<8x128xi1>, vector<8x128xf32>
    %c32_i32_34 = arith.constant 32 : i32
    %89 = tpu.dynamic_rotate %88 by %c32_i32_34 dim 1 : vector<8x128xf32>, i32 -> vector<8x128xf32>
    %c96_i32_35 = arith.constant 96 : i32
    %90 = tpu.dynamic_rotate %88 by %c96_i32_35 dim 1 : vector<8x128xf32>, i32 -> vector<8x128xf32>
    %c64_i32_36 = arith.constant 64 : i32
    %91 = tpu.dynamic_rotate %88 by %c64_i32_36 dim 1 : vector<8x128xf32>, i32 -> vector<8x128xf32>
    %92 = arith.mulf %88, %52 : vector<8x128xf32>
    %93 = arith.mulf %89, %90 : vector<8x128xf32>
    %94 = arith.addf %92, %93 : vector<8x128xf32>
    %95 = math.tanh %94 : vector<8x128xf32>
    %96 = arith.mulf %91, %95 : vector<8x128xf32>
    %97 = vector.extract_strided_slice %76 {offsets = [0, 128], sizes = [8, 128], strides = [1, 1]} : vector<8x256xf32> to vector<8x128xf32>
    %98 = vector.broadcast %11 : vector<1x128xf32> to vector<8x128xf32>
    %99 = arith.addf %97, %98 : vector<8x128xf32>
    %cst_37 = arith.constant 5.000000e-01 : f32
    %100 = vector.broadcast %cst_37 : f32 to vector<8x128xf32>
    %101 = arith.mulf %100, %99 : vector<8x128xf32>
    %102 = arith.select %3, %99, %101 : vector<8x128xi1>, vector<8x128xf32>
    %103 = math.tanh %102 : vector<8x128xf32>
    %cst_38 = arith.constant 1.000000e+00 : f32
    %104 = vector.broadcast %cst_38 : f32 to vector<8x128xf32>
    %105 = arith.addf %103, %104 : vector<8x128xf32>
    %cst_39 = arith.constant 5.000000e-01 : f32
    %106 = vector.broadcast %cst_39 : f32 to vector<8x128xf32>
    %107 = arith.mulf %106, %105 : vector<8x128xf32>
    %108 = arith.select %3, %103, %107 : vector<8x128xi1>, vector<8x128xf32>
    %c32_i32_40 = arith.constant 32 : i32
    %109 = tpu.dynamic_rotate %108 by %c32_i32_40 dim 1 : vector<8x128xf32>, i32 -> vector<8x128xf32>
    %c96_i32_41 = arith.constant 96 : i32
    %110 = tpu.dynamic_rotate %108 by %c96_i32_41 dim 1 : vector<8x128xf32>, i32 -> vector<8x128xf32>
    %c64_i32_42 = arith.constant 64 : i32
    %111 = tpu.dynamic_rotate %108 by %c64_i32_42 dim 1 : vector<8x128xf32>, i32 -> vector<8x128xf32>
    %112 = arith.mulf %108, %72 : vector<8x128xf32>
    %113 = arith.mulf %109, %110 : vector<8x128xf32>
    %114 = arith.addf %112, %113 : vector<8x128xf32>
    %115 = math.tanh %114 : vector<8x128xf32>
    %116 = arith.mulf %111, %115 : vector<8x128xf32>
    %117 = tpu.concatenate %96, %116 in 1 : vector<8x128xf32>, vector<8x128xf32> -> vector<8x256xf32>
    %cst_43 = arith.constant dense<0.000000e+00> : vector<8x256xf32>
    %118 = tpu.matmul %117, %10, %cst_43 {dimension_numbers = #tpu.dot_dimension_numbers<[1], [0], [0], [1], [0, 0, 1, 1], [], []>} : vector<8x256xf32>, vector<256x256xf32>, vector<8x256xf32> -> vector<8x256xf32>
    %119 = vector.extract_strided_slice %118 {offsets = [0, 0], sizes = [8, 128], strides = [1, 1]} : vector<8x256xf32> to vector<8x128xf32>
    %120 = vector.extract_strided_slice %9 {offsets = [24, 0], sizes = [8, 128], strides = [1, 1]} : vector<56x128xf32> to vector<8x128xf32>
    %121 = arith.addf %119, %120 : vector<8x128xf32>
    %cst_44 = arith.constant 5.000000e-01 : f32
    %122 = vector.broadcast %cst_44 : f32 to vector<8x128xf32>
    %123 = arith.mulf %122, %121 : vector<8x128xf32>
    %124 = arith.select %3, %121, %123 : vector<8x128xi1>, vector<8x128xf32>
    %125 = math.tanh %124 : vector<8x128xf32>
    %cst_45 = arith.constant 1.000000e+00 : f32
    %126 = vector.broadcast %cst_45 : f32 to vector<8x128xf32>
    %127 = arith.addf %125, %126 : vector<8x128xf32>
    %cst_46 = arith.constant 5.000000e-01 : f32
    %128 = vector.broadcast %cst_46 : f32 to vector<8x128xf32>
    %129 = arith.mulf %128, %127 : vector<8x128xf32>
    %130 = arith.select %3, %125, %129 : vector<8x128xi1>, vector<8x128xf32>
    %c32_i32_47 = arith.constant 32 : i32
    %131 = tpu.dynamic_rotate %130 by %c32_i32_47 dim 1 : vector<8x128xf32>, i32 -> vector<8x128xf32>
    %c96_i32_48 = arith.constant 96 : i32
    %132 = tpu.dynamic_rotate %130 by %c96_i32_48 dim 1 : vector<8x128xf32>, i32 -> vector<8x128xf32>
    %c64_i32_49 = arith.constant 64 : i32
    %133 = tpu.dynamic_rotate %130 by %c64_i32_49 dim 1 : vector<8x128xf32>, i32 -> vector<8x128xf32>
    %134 = arith.mulf %130, %94 : vector<8x128xf32>
    %135 = arith.mulf %131, %132 : vector<8x128xf32>
    %136 = arith.addf %134, %135 : vector<8x128xf32>
    %137 = math.tanh %136 : vector<8x128xf32>
    %138 = arith.mulf %133, %137 : vector<8x128xf32>
    %139 = vector.extract_strided_slice %118 {offsets = [0, 128], sizes = [8, 128], strides = [1, 1]} : vector<8x256xf32> to vector<8x128xf32>
    %140 = vector.broadcast %11 : vector<1x128xf32> to vector<8x128xf32>
    %141 = arith.addf %139, %140 : vector<8x128xf32>
    %cst_50 = arith.constant 5.000000e-01 : f32
    %142 = vector.broadcast %cst_50 : f32 to vector<8x128xf32>
    %143 = arith.mulf %142, %141 : vector<8x128xf32>
    %144 = arith.select %3, %141, %143 : vector<8x128xi1>, vector<8x128xf32>
    %145 = math.tanh %144 : vector<8x128xf32>
    %cst_51 = arith.constant 1.000000e+00 : f32
    %146 = vector.broadcast %cst_51 : f32 to vector<8x128xf32>
    %147 = arith.addf %145, %146 : vector<8x128xf32>
    %cst_52 = arith.constant 5.000000e-01 : f32
    %148 = vector.broadcast %cst_52 : f32 to vector<8x128xf32>
    %149 = arith.mulf %148, %147 : vector<8x128xf32>
    %150 = arith.select %3, %145, %149 : vector<8x128xi1>, vector<8x128xf32>
    %c32_i32_53 = arith.constant 32 : i32
    %151 = tpu.dynamic_rotate %150 by %c32_i32_53 dim 1 : vector<8x128xf32>, i32 -> vector<8x128xf32>
    %c96_i32_54 = arith.constant 96 : i32
    %152 = tpu.dynamic_rotate %150 by %c96_i32_54 dim 1 : vector<8x128xf32>, i32 -> vector<8x128xf32>
    %c64_i32_55 = arith.constant 64 : i32
    %153 = tpu.dynamic_rotate %150 by %c64_i32_55 dim 1 : vector<8x128xf32>, i32 -> vector<8x128xf32>
    %154 = arith.mulf %150, %114 : vector<8x128xf32>
    %155 = arith.mulf %151, %152 : vector<8x128xf32>
    %156 = arith.addf %154, %155 : vector<8x128xf32>
    %157 = math.tanh %156 : vector<8x128xf32>
    %158 = arith.mulf %153, %157 : vector<8x128xf32>
    %159 = tpu.concatenate %138, %158 in 1 : vector<8x128xf32>, vector<8x128xf32> -> vector<8x256xf32>
    %cst_56 = arith.constant dense<0.000000e+00> : vector<8x256xf32>
    %160 = tpu.matmul %159, %10, %cst_56 {dimension_numbers = #tpu.dot_dimension_numbers<[1], [0], [0], [1], [0, 0, 1, 1], [], []>} : vector<8x256xf32>, vector<256x256xf32>, vector<8x256xf32> -> vector<8x256xf32>
    %161 = vector.extract_strided_slice %160 {offsets = [0, 0], sizes = [8, 128], strides = [1, 1]} : vector<8x256xf32> to vector<8x128xf32>
    %162 = vector.extract_strided_slice %9 {offsets = [32, 0], sizes = [8, 128], strides = [1, 1]} : vector<56x128xf32> to vector<8x128xf32>
    %163 = arith.addf %161, %162 : vector<8x128xf32>
    %cst_57 = arith.constant 5.000000e-01 : f32
    %164 = vector.broadcast %cst_57 : f32 to vector<8x128xf32>
    %165 = arith.mulf %164, %163 : vector<8x128xf32>
    %166 = arith.select %3, %163, %165 : vector<8x128xi1>, vector<8x128xf32>
    %167 = math.tanh %166 : vector<8x128xf32>
    %cst_58 = arith.constant 1.000000e+00 : f32
    %168 = vector.broadcast %cst_58 : f32 to vector<8x128xf32>
    %169 = arith.addf %167, %168 : vector<8x128xf32>
    %cst_59 = arith.constant 5.000000e-01 : f32
    %170 = vector.broadcast %cst_59 : f32 to vector<8x128xf32>
    %171 = arith.mulf %170, %169 : vector<8x128xf32>
    %172 = arith.select %3, %167, %171 : vector<8x128xi1>, vector<8x128xf32>
    %c32_i32_60 = arith.constant 32 : i32
    %173 = tpu.dynamic_rotate %172 by %c32_i32_60 dim 1 : vector<8x128xf32>, i32 -> vector<8x128xf32>
    %c96_i32_61 = arith.constant 96 : i32
    %174 = tpu.dynamic_rotate %172 by %c96_i32_61 dim 1 : vector<8x128xf32>, i32 -> vector<8x128xf32>
    %c64_i32_62 = arith.constant 64 : i32
    %175 = tpu.dynamic_rotate %172 by %c64_i32_62 dim 1 : vector<8x128xf32>, i32 -> vector<8x128xf32>
    %176 = arith.mulf %172, %136 : vector<8x128xf32>
    %177 = arith.mulf %173, %174 : vector<8x128xf32>
    %178 = arith.addf %176, %177 : vector<8x128xf32>
    %179 = math.tanh %178 : vector<8x128xf32>
    %180 = arith.mulf %175, %179 : vector<8x128xf32>
    %181 = vector.extract_strided_slice %160 {offsets = [0, 128], sizes = [8, 128], strides = [1, 1]} : vector<8x256xf32> to vector<8x128xf32>
    %182 = vector.broadcast %11 : vector<1x128xf32> to vector<8x128xf32>
    %183 = arith.addf %181, %182 : vector<8x128xf32>
    %cst_63 = arith.constant 5.000000e-01 : f32
    %184 = vector.broadcast %cst_63 : f32 to vector<8x128xf32>
    %185 = arith.mulf %184, %183 : vector<8x128xf32>
    %186 = arith.select %3, %183, %185 : vector<8x128xi1>, vector<8x128xf32>
    %187 = math.tanh %186 : vector<8x128xf32>
    %cst_64 = arith.constant 1.000000e+00 : f32
    %188 = vector.broadcast %cst_64 : f32 to vector<8x128xf32>
    %189 = arith.addf %187, %188 : vector<8x128xf32>
    %cst_65 = arith.constant 5.000000e-01 : f32
    %190 = vector.broadcast %cst_65 : f32 to vector<8x128xf32>
    %191 = arith.mulf %190, %189 : vector<8x128xf32>
    %192 = arith.select %3, %187, %191 : vector<8x128xi1>, vector<8x128xf32>
    %c32_i32_66 = arith.constant 32 : i32
    %193 = tpu.dynamic_rotate %192 by %c32_i32_66 dim 1 : vector<8x128xf32>, i32 -> vector<8x128xf32>
    %c96_i32_67 = arith.constant 96 : i32
    %194 = tpu.dynamic_rotate %192 by %c96_i32_67 dim 1 : vector<8x128xf32>, i32 -> vector<8x128xf32>
    %c64_i32_68 = arith.constant 64 : i32
    %195 = tpu.dynamic_rotate %192 by %c64_i32_68 dim 1 : vector<8x128xf32>, i32 -> vector<8x128xf32>
    %196 = arith.mulf %192, %156 : vector<8x128xf32>
    %197 = arith.mulf %193, %194 : vector<8x128xf32>
    %198 = arith.addf %196, %197 : vector<8x128xf32>
    %199 = math.tanh %198 : vector<8x128xf32>
    %200 = arith.mulf %195, %199 : vector<8x128xf32>
    %201 = tpu.concatenate %180, %200 in 1 : vector<8x128xf32>, vector<8x128xf32> -> vector<8x256xf32>
    %cst_69 = arith.constant dense<0.000000e+00> : vector<8x256xf32>
    %202 = tpu.matmul %201, %10, %cst_69 {dimension_numbers = #tpu.dot_dimension_numbers<[1], [0], [0], [1], [0, 0, 1, 1], [], []>} : vector<8x256xf32>, vector<256x256xf32>, vector<8x256xf32> -> vector<8x256xf32>
    %203 = vector.extract_strided_slice %202 {offsets = [0, 0], sizes = [8, 128], strides = [1, 1]} : vector<8x256xf32> to vector<8x128xf32>
    %204 = vector.extract_strided_slice %9 {offsets = [40, 0], sizes = [8, 128], strides = [1, 1]} : vector<56x128xf32> to vector<8x128xf32>
    %205 = arith.addf %203, %204 : vector<8x128xf32>
    %cst_70 = arith.constant 5.000000e-01 : f32
    %206 = vector.broadcast %cst_70 : f32 to vector<8x128xf32>
    %207 = arith.mulf %206, %205 : vector<8x128xf32>
    %208 = arith.select %3, %205, %207 : vector<8x128xi1>, vector<8x128xf32>
    %209 = math.tanh %208 : vector<8x128xf32>
    %cst_71 = arith.constant 1.000000e+00 : f32
    %210 = vector.broadcast %cst_71 : f32 to vector<8x128xf32>
    %211 = arith.addf %209, %210 : vector<8x128xf32>
    %cst_72 = arith.constant 5.000000e-01 : f32
    %212 = vector.broadcast %cst_72 : f32 to vector<8x128xf32>
    %213 = arith.mulf %212, %211 : vector<8x128xf32>
    %214 = arith.select %3, %209, %213 : vector<8x128xi1>, vector<8x128xf32>
    %c32_i32_73 = arith.constant 32 : i32
    %215 = tpu.dynamic_rotate %214 by %c32_i32_73 dim 1 : vector<8x128xf32>, i32 -> vector<8x128xf32>
    %c96_i32_74 = arith.constant 96 : i32
    %216 = tpu.dynamic_rotate %214 by %c96_i32_74 dim 1 : vector<8x128xf32>, i32 -> vector<8x128xf32>
    %c64_i32_75 = arith.constant 64 : i32
    %217 = tpu.dynamic_rotate %214 by %c64_i32_75 dim 1 : vector<8x128xf32>, i32 -> vector<8x128xf32>
    %218 = arith.mulf %214, %178 : vector<8x128xf32>
    %219 = arith.mulf %215, %216 : vector<8x128xf32>
    %220 = arith.addf %218, %219 : vector<8x128xf32>
    %221 = math.tanh %220 : vector<8x128xf32>
    %222 = arith.mulf %217, %221 : vector<8x128xf32>
    %223 = vector.extract_strided_slice %202 {offsets = [0, 128], sizes = [8, 128], strides = [1, 1]} : vector<8x256xf32> to vector<8x128xf32>
    %224 = vector.broadcast %11 : vector<1x128xf32> to vector<8x128xf32>
    %225 = arith.addf %223, %224 : vector<8x128xf32>
    %cst_76 = arith.constant 5.000000e-01 : f32
    %226 = vector.broadcast %cst_76 : f32 to vector<8x128xf32>
    %227 = arith.mulf %226, %225 : vector<8x128xf32>
    %228 = arith.select %3, %225, %227 : vector<8x128xi1>, vector<8x128xf32>
    %229 = math.tanh %228 : vector<8x128xf32>
    %cst_77 = arith.constant 1.000000e+00 : f32
    %230 = vector.broadcast %cst_77 : f32 to vector<8x128xf32>
    %231 = arith.addf %229, %230 : vector<8x128xf32>
    %cst_78 = arith.constant 5.000000e-01 : f32
    %232 = vector.broadcast %cst_78 : f32 to vector<8x128xf32>
    %233 = arith.mulf %232, %231 : vector<8x128xf32>
    %234 = arith.select %3, %229, %233 : vector<8x128xi1>, vector<8x128xf32>
    %c32_i32_79 = arith.constant 32 : i32
    %235 = tpu.dynamic_rotate %234 by %c32_i32_79 dim 1 : vector<8x128xf32>, i32 -> vector<8x128xf32>
    %c96_i32_80 = arith.constant 96 : i32
    %236 = tpu.dynamic_rotate %234 by %c96_i32_80 dim 1 : vector<8x128xf32>, i32 -> vector<8x128xf32>
    %c64_i32_81 = arith.constant 64 : i32
    %237 = tpu.dynamic_rotate %234 by %c64_i32_81 dim 1 : vector<8x128xf32>, i32 -> vector<8x128xf32>
    %238 = arith.mulf %234, %198 : vector<8x128xf32>
    %239 = arith.mulf %235, %236 : vector<8x128xf32>
    %240 = arith.addf %238, %239 : vector<8x128xf32>
    %241 = math.tanh %240 : vector<8x128xf32>
    %242 = arith.mulf %237, %241 : vector<8x128xf32>
    %243 = tpu.concatenate %222, %242 in 1 : vector<8x128xf32>, vector<8x128xf32> -> vector<8x256xf32>
    %cst_82 = arith.constant dense<0.000000e+00> : vector<8x256xf32>
    %244 = tpu.matmul %243, %10, %cst_82 {dimension_numbers = #tpu.dot_dimension_numbers<[1], [0], [0], [1], [0, 0, 1, 1], [], []>} : vector<8x256xf32>, vector<256x256xf32>, vector<8x256xf32> -> vector<8x256xf32>
    %245 = vector.extract_strided_slice %244 {offsets = [0, 0], sizes = [8, 128], strides = [1, 1]} : vector<8x256xf32> to vector<8x128xf32>
    %246 = vector.extract_strided_slice %9 {offsets = [48, 0], sizes = [8, 128], strides = [1, 1]} : vector<56x128xf32> to vector<8x128xf32>
    %247 = arith.addf %245, %246 : vector<8x128xf32>
    %cst_83 = arith.constant 5.000000e-01 : f32
    %248 = vector.broadcast %cst_83 : f32 to vector<8x128xf32>
    %249 = arith.mulf %248, %247 : vector<8x128xf32>
    %250 = arith.select %3, %247, %249 : vector<8x128xi1>, vector<8x128xf32>
    %251 = math.tanh %250 : vector<8x128xf32>
    %cst_84 = arith.constant 1.000000e+00 : f32
    %252 = vector.broadcast %cst_84 : f32 to vector<8x128xf32>
    %253 = arith.addf %251, %252 : vector<8x128xf32>
    %cst_85 = arith.constant 5.000000e-01 : f32
    %254 = vector.broadcast %cst_85 : f32 to vector<8x128xf32>
    %255 = arith.mulf %254, %253 : vector<8x128xf32>
    %256 = arith.select %3, %251, %255 : vector<8x128xi1>, vector<8x128xf32>
    %c32_i32_86 = arith.constant 32 : i32
    %257 = tpu.dynamic_rotate %256 by %c32_i32_86 dim 1 : vector<8x128xf32>, i32 -> vector<8x128xf32>
    %c96_i32_87 = arith.constant 96 : i32
    %258 = tpu.dynamic_rotate %256 by %c96_i32_87 dim 1 : vector<8x128xf32>, i32 -> vector<8x128xf32>
    %c64_i32_88 = arith.constant 64 : i32
    %259 = tpu.dynamic_rotate %256 by %c64_i32_88 dim 1 : vector<8x128xf32>, i32 -> vector<8x128xf32>
    %260 = arith.mulf %256, %220 : vector<8x128xf32>
    %261 = arith.mulf %257, %258 : vector<8x128xf32>
    %262 = arith.addf %260, %261 : vector<8x128xf32>
    %263 = math.tanh %262 : vector<8x128xf32>
    %264 = arith.mulf %259, %263 : vector<8x128xf32>
    %265 = vector.extract_strided_slice %244 {offsets = [0, 128], sizes = [8, 128], strides = [1, 1]} : vector<8x256xf32> to vector<8x128xf32>
    %266 = vector.broadcast %11 : vector<1x128xf32> to vector<8x128xf32>
    %267 = arith.addf %265, %266 : vector<8x128xf32>
    %cst_89 = arith.constant 5.000000e-01 : f32
    %268 = vector.broadcast %cst_89 : f32 to vector<8x128xf32>
    %269 = arith.mulf %268, %267 : vector<8x128xf32>
    %270 = arith.select %3, %267, %269 : vector<8x128xi1>, vector<8x128xf32>
    %271 = math.tanh %270 : vector<8x128xf32>
    %cst_90 = arith.constant 1.000000e+00 : f32
    %272 = vector.broadcast %cst_90 : f32 to vector<8x128xf32>
    %273 = arith.addf %271, %272 : vector<8x128xf32>
    %cst_91 = arith.constant 5.000000e-01 : f32
    %274 = vector.broadcast %cst_91 : f32 to vector<8x128xf32>
    %275 = arith.mulf %274, %273 : vector<8x128xf32>
    %276 = arith.select %3, %271, %275 : vector<8x128xi1>, vector<8x128xf32>
    %c32_i32_92 = arith.constant 32 : i32
    %277 = tpu.dynamic_rotate %276 by %c32_i32_92 dim 1 : vector<8x128xf32>, i32 -> vector<8x128xf32>
    %c96_i32_93 = arith.constant 96 : i32
    %278 = tpu.dynamic_rotate %276 by %c96_i32_93 dim 1 : vector<8x128xf32>, i32 -> vector<8x128xf32>
    %c64_i32_94 = arith.constant 64 : i32
    %279 = tpu.dynamic_rotate %276 by %c64_i32_94 dim 1 : vector<8x128xf32>, i32 -> vector<8x128xf32>
    %280 = arith.mulf %276, %240 : vector<8x128xf32>
    %281 = arith.mulf %277, %278 : vector<8x128xf32>
    %282 = arith.addf %280, %281 : vector<8x128xf32>
    %283 = math.tanh %282 : vector<8x128xf32>
    %284 = arith.mulf %279, %283 : vector<8x128xf32>
    %285 = tpu.concatenate %264, %284 in 1 : vector<8x128xf32>, vector<8x128xf32> -> vector<8x256xf32>
    %cst_95 = arith.constant dense<0.000000e+00> : vector<8x256xf32>
    %286 = tpu.matmul %285, %10, %cst_95 {dimension_numbers = #tpu.dot_dimension_numbers<[1], [0], [0], [1], [0, 0, 1, 1], [], []>} : vector<8x256xf32>, vector<256x256xf32>, vector<8x256xf32> -> vector<8x256xf32>
    %287 = vector.extract_strided_slice %286 {offsets = [0, 128], sizes = [8, 128], strides = [1, 1]} : vector<8x256xf32> to vector<8x128xf32>
    %288 = vector.broadcast %11 : vector<1x128xf32> to vector<8x128xf32>
    %289 = arith.addf %287, %288 : vector<8x128xf32>
    %cst_96 = arith.constant 5.000000e-01 : f32
    %290 = vector.broadcast %cst_96 : f32 to vector<8x128xf32>
    %291 = arith.mulf %290, %289 : vector<8x128xf32>
    %292 = arith.select %3, %289, %291 : vector<8x128xi1>, vector<8x128xf32>
    %293 = math.tanh %292 : vector<8x128xf32>
    %cst_97 = arith.constant 1.000000e+00 : f32
    %294 = vector.broadcast %cst_97 : f32 to vector<8x128xf32>
    %295 = arith.addf %293, %294 : vector<8x128xf32>
    %cst_98 = arith.constant 5.000000e-01 : f32
    %296 = vector.broadcast %cst_98 : f32 to vector<8x128xf32>
    %297 = arith.mulf %296, %295 : vector<8x128xf32>
    %298 = arith.select %3, %293, %297 : vector<8x128xi1>, vector<8x128xf32>
    %c32_i32_99 = arith.constant 32 : i32
    %299 = tpu.dynamic_rotate %298 by %c32_i32_99 dim 1 : vector<8x128xf32>, i32 -> vector<8x128xf32>
    %c96_i32_100 = arith.constant 96 : i32
    %300 = tpu.dynamic_rotate %298 by %c96_i32_100 dim 1 : vector<8x128xf32>, i32 -> vector<8x128xf32>
    %c64_i32_101 = arith.constant 64 : i32
    %301 = tpu.dynamic_rotate %298 by %c64_i32_101 dim 1 : vector<8x128xf32>, i32 -> vector<8x128xf32>
    %302 = arith.mulf %298, %282 : vector<8x128xf32>
    %303 = arith.mulf %299, %300 : vector<8x128xf32>
    %304 = arith.addf %302, %303 : vector<8x128xf32>
    %305 = math.tanh %304 : vector<8x128xf32>
    %306 = arith.mulf %301, %305 : vector<8x128xf32>
    %c0_102 = arith.constant 0 : index
    %c0_103 = arith.constant 0 : index
    %307 = vector.load %arg6[%c0_102, %c0_103] : memref<128x128xf32, #tpu.memory_space<vmem>>, vector<128x128xf32>
    %cst_104 = arith.constant dense<0.000000e+00> : vector<8x128xf32>
    %308 = tpu.matmul %306, %307, %cst_104 {dimension_numbers = #tpu.dot_dimension_numbers<[1], [0], [0], [1], [0, 0, 1, 1], [], []>} : vector<8x128xf32>, vector<128x128xf32>, vector<8x128xf32> -> vector<8x128xf32>
    %c0_105 = arith.constant 0 : index
    %c0_106 = arith.constant 0 : index
    %309 = vector.load %arg7[%c0_105, %c0_106] : memref<1x128xf32, #tpu.memory_space<vmem>>, vector<1x128xf32>
    %310 = vector.broadcast %309 : vector<1x128xf32> to vector<8x128xf32>
    %311 = arith.addf %308, %310 : vector<8x128xf32>
    %cst_107 = arith.constant 0.000000e+00 : f32
    %312 = vector.broadcast %cst_107 : f32 to vector<8x128xf32>
    %313 = arith.maximumf %311, %312 : vector<8x128xf32>
    %c0_108 = arith.constant 0 : index
    %c0_109 = arith.constant 0 : index
    %314 = vector.load %arg8[%c0_108, %c0_109] : memref<128x128xf32, #tpu.memory_space<vmem>>, vector<128x128xf32>
    %cst_110 = arith.constant dense<0.000000e+00> : vector<8x128xf32>
    %315 = tpu.matmul %313, %314, %cst_110 {dimension_numbers = #tpu.dot_dimension_numbers<[1], [0], [0], [1], [0, 0, 1, 1], [], []>} : vector<8x128xf32>, vector<128x128xf32>, vector<8x128xf32> -> vector<8x128xf32>
    %c0_111 = arith.constant 0 : index
    %c0_112 = arith.constant 0 : index
    %316 = vector.load %arg9[%c0_111, %c0_112] : memref<1x128xf32, #tpu.memory_space<vmem>>, vector<1x128xf32>
    %317 = vector.broadcast %316 : vector<1x128xf32> to vector<8x128xf32>
    %318 = arith.addf %315, %317 : vector<8x128xf32>
    %c0_113 = arith.constant 0 : index
    %c0_114 = arith.constant 0 : index
    %319 = vector.load %arg10[%c0_113, %c0_114] : memref<8x128xf32, #tpu.memory_space<vmem>>, vector<8x128xf32>
    tpu.vector_store %arg10[%c0_113, %c0_114], %318 {strides = array<i32>} : memref<8x128xf32, #tpu.memory_space<vmem>>, vector<8x128xf32>,
    return
  }
  func.func @transform_0(%arg0: i32) -> (i32, i32, i32) {
    %c0_i32 = arith.constant 0 : i32
    %c0_i32_0 = arith.constant 0 : i32
    %c0_i32_1 = arith.constant 0 : i32
    return %c0_i32, %arg0, %c0_i32_0 : i32, i32, i32
  }
  func.func @transform_1(%arg0: i32) -> (i32, i32) {
    %c0_i32 = arith.constant 0 : i32
    %c0_i32_0 = arith.constant 0 : i32
    %c0_i32_1 = arith.constant 0 : i32
    return %c0_i32, %c0_i32_0 : i32, i32
  }
  func.func @transform_2(%arg0: i32) -> (i32, i32) {
    %c0_i32 = arith.constant 0 : i32
    %c0_i32_0 = arith.constant 0 : i32
    %c0_i32_1 = arith.constant 0 : i32
    return %c0_i32, %c0_i32_0 : i32, i32
  }
  func.func @transform_3(%arg0: i32) -> (i32, i32) {
    %c0_i32 = arith.constant 0 : i32
    %c0_i32_0 = arith.constant 0 : i32
    %c0_i32_1 = arith.constant 0 : i32
    return %c0_i32, %c0_i32_0 : i32, i32
  }
  func.func @transform_4(%arg0: i32) -> (i32, i32) {
    %c0_i32 = arith.constant 0 : i32
    %c0_i32_0 = arith.constant 0 : i32
    %c0_i32_1 = arith.constant 0 : i32
    return %c0_i32, %c0_i32_0 : i32, i32
  }
  func.func @transform_5(%arg0: i32) -> (i32, i32) {
    %c0_i32 = arith.constant 0 : i32
    %c0_i32_0 = arith.constant 0 : i32
    %c0_i32_1 = arith.constant 0 : i32
    return %c0_i32, %c0_i32_0 : i32, i32
  }
  func.func @transform_6(%arg0: i32) -> (i32, i32) {
    %c0_i32 = arith.constant 0 : i32
    %c0_i32_0 = arith.constant 0 : i32
    %c0_i32_1 = arith.constant 0 : i32
    return %c0_i32, %c0_i32_0 : i32, i32
  }
  func.func @transform_7(%arg0: i32) -> (i32, i32) {
    %c0_i32 = arith.constant 0 : i32
    %c0_i32_0 = arith.constant 0 : i32
    %c0_i32_1 = arith.constant 0 : i32
    return %c0_i32, %c0_i32_0 : i32, i32
  }
  func.func @transform_8(%arg0: i32) -> (i32, i32) {
    %c0_i32 = arith.constant 0 : i32
    %c0_i32_0 = arith.constant 0 : i32
    %c0_i32_1 = arith.constant 0 : i32
    return %c0_i32, %c0_i32_0 : i32, i32
  }
  func.func @transform_9(%arg0: i32) -> (i32, i32) {
    %c0_i32 = arith.constant 0 : i32
    %c0_i32_0 = arith.constant 0 : i32
    return %arg0, %c0_i32 : i32, i32
  }
}

</mosaic_0001>

<bundles_post_ra>
// kernel: a_call__.1
= control target key start
LH: loop header
LB: loop body
LE: loop exit
PB: predicated region body
PF: predicated region fallthrough
CT: control target
= control target key end

     0   :  { %14 = vsyncpa [#allocation3], 0  ;;  %s2668_s0 = inlined_call_operand.vmem [shape: f32[7,8,17], index: 0, kind: input, shape index: {}]   ;;  %s2669_s1 = inlined_call_operand.vmem [shape: f32[17,128], index: 1, kind: input, shape index: {}]   ;;  %s2670_s2 = inlined_call_operand.vmem [shape: f32[1,128], index: 2, kind: input, shape index: {}]   ;;  %s2671_s3 = inlined_call_operand.hbm [shape: f32[256,256], index: 3, kind: input, shape index: {}]   ;;  %s2672_s4 = inlined_call_operand.vmem [shape: f32[1,128], index: 4, kind: input, shape index: {}]   ;;  %s2673_s5 = inlined_call_operand.hbm [shape: f32[128,128], index: 5, kind: input, shape index: {}]   ;;  %s2674_s6 = inlined_call_operand.vmem [shape: f32[1,128], index: 6, kind: input, shape index: {}]   ;;  %s2675_s7 = inlined_call_operand.vmem [shape: f32[128,128], index: 7, kind: input, shape index: {}]   ;;  %s2676_s8 = inlined_call_operand.vmem [shape: f32[1,128], index: 8, kind: input, shape index: {}]   ;;  %s2677_s9 = inlined_call_operand.vmem [shape: f32[8,128], index: 9, kind: output, shape index: {}]  }
   0x1   :  { %15 = vsyncpa [#allocation5], 0  ;;  %s1986_s30 = smov [#allocation2]   ;;  %s1938_s13 = scalar_lea.hbm %s2671_s3, 8192 }
   0x2   :  { %s27_s10 = sshll.u32 %s1986_s30, 4  ;;  %p1939_p0 = scmp.ne.s32.totalorder %s2671_s3, %s1938_s13  ;;  %s28_s10 = int_to_ptr.vmem [resolvable:$true] %s27_s10 }
   0x3   :  { %p1942_p1 = scmp.lt.u32.totalorder %s1938_s13, %s2671_s3 }
   0x5   :  { %p1944_p2 = pnand %p1942_p1, %p1939_p0 }
   0x7   :  { %1947 = shalt.err (!%p1944_p2)
}
   0x8   :  { %s1948_s18 = scalar_lea.vmem %s28_s10, 8192  ;;  %p1953_p4 = scmp.lt.s32.totalorder %s28_s10, %s28_s10 }
   0x9   :  { %p1949_p3 = scmp.ne.s32.totalorder %s28_s10, %s1948_s18  ;;  %p1954_p5 = scmp.lt.s32.totalorder %s1948_s18, %s1948_s18 }
   0xb   :  { %p1955_p6 = por %p1954_p5, %p1953_p4 }
   0xd   :  { %p1956_p7 = pnand %p1955_p6, %p1949_p3 }
   0xf   :  { %1959 = shalt.err (!%p1956_p7)
}
  0x10   :  { %s1987_s19 = smov 256   ;;  %s1988_s20 = smov 16  }
  0x11   :  { %33 = dma.hbm_to_vmem [thread:$0]  %s2671_s3, 8192, %s28_s10, [#allocation3], %s1987_s19, %s1987_s19, %s1988_s20  }
  0x12   :  { %s1989_s23 = smov [#allocation4]   ;;  %s1960_s27 = scalar_lea.hbm %s2673_s5, 2048 }
  0x13   :  { %s41_s24 = sshll.u32 %s1989_s23, 4  ;;  %p1961_p8 = scmp.ne.s32.totalorder %s2673_s5, %s1960_s27  ;;  %s42_s24 = int_to_ptr.vmem [resolvable:$true] %s41_s24 }
  0x14   :  { %p1964_p9 = scmp.lt.u32.totalorder %s1960_s27, %s2673_s5 }
  0x16   :  { %p1966_p10 = pnand %p1964_p9, %p1961_p8 }
  0x18   :  { %1969 = shalt.err (!%p1966_p10)
}
  0x19   :  { %s1970_s12 = scalar_lea.vmem %s42_s24, 2048  ;;  %p1975_p12 = scmp.lt.s32.totalorder %s42_s24, %s42_s24 }
  0x1a   :  { %p1971_p11 = scmp.ne.s32.totalorder %s42_s24, %s1970_s12  ;;  %p1976_p13 = scmp.lt.s32.totalorder %s1970_s12, %s1970_s12 }
  0x1c   :  { %p1977_p0 = por %p1976_p13, %p1975_p12 }
  0x1e   :  { %p1978_p1 = pnand %p1977_p0, %p1971_p11 }
  0x20   :  { %1981 = shalt.err (!%p1978_p1)
}
  0x21   :  { %s1990_s3 = smov 128   ;;  %s1991_s10 = smov 8  }
  0x22   :  { %47 = dma.hbm_to_vmem [thread:$0]  %s2673_s5, 2048, %s42_s24, [#allocation5], %s1990_s3, %s1990_s3, %s1991_s10  }
  0x23   :  { %1982 = dma.done.wait [#allocation3], 8192  }
  0x24   :  { %1983 = vsyncadd [#allocation3], 4294959104 }
  0x25   :  { %1984 = dma.done.wait [#allocation5], 2048  }
  0x26   :  { %1985 = vsyncadd [#allocation5], 4294965248  ;;  %v1992_v0 = vmov 0.0|0.0   ;;  %vm1993_vm0 = vmmov 0   ;;  %v1994_v1 = vmov 0.0   ;;  %v70_v2 = vld [vmem:[%s2669_s1] sm:$0xff] }
  0x27   :  { %1371 = vmatprep.subr.bf16.mxu0 %v1992_v0  ;;  %1280 = vmatprep.mubr.msk.f32.mxu0 %vm1993_vm0, %v1994_v1  ;;  %v71_v3 = vld [vmem:[%s2669_s1 + $0x8] sm:$0xff]  ;;  %v72_v5 = vld [vmem:[%s2669_s1 + $0x10] sm:$0x1]  ;;  %vm102_vm1 = vcmask 1040384   ;;  %v60_v6 = vld [vmem:[%s2668_s0] sm:$0xff]  ;;  %vm80_vm2 = vcmask 138240  }
  0x28   :  { %352 = vmatprep.mubr.f32.mxu1 %v1994_v1  ;;  %v1372_v4 = vpack.c.bf16 %v71_v3, %v70_v2  ;;  %v207_v7 = vld [vmem:[#allocation2 + $0x8] sm:$0xff]  ;;  %v209_v8 = vld [vmem:[#allocation2 + $0x18] sm:$0xff]  ;;  %v206_v9 = vld [vmem:[#allocation2] sm:$0xff]  ;;  %s1995_s24 = smov 64   ;;  %s1996_s25 = smov 32  }
  0x29   :  { %v2092_v10 = vpack.c.bf16 %v209_v8, %v207_v7  ;;  %v208_v11 = vld [vmem:[#allocation2 + $0x10] sm:$0xff]  ;;  %v211_v12 = vld [vmem:[#allocation2 + $0x28] sm:$0xff]  ;;  %v213_v13 = vld [vmem:[#allocation2 + $0x38] sm:$0xff]  ;;  %s1997_s26 = smov 96  }
  0x2a   :  { %1373 = vmatpush3.bf16.msra.mxu0 %v1372_v4  ;;  %v2094_v14 = vpack.c.bf16 %v208_v11, %v206_v9  ;;  %v2096_v15 = vpack.c.bf16 %v213_v13, %v211_v12  ;;  %v210_v16 = vld [vmem:[#allocation2 + $0x20] sm:$0xff]  ;;  %v212_v17 = vld [vmem:[#allocation2 + $0x30] sm:$0xff]  ;;  %v215_v18 = vld [vmem:[#allocation2 + $0x48] sm:$0xff]  ;;  %v67_v12 = vlaneseq }
  0x2b   :  { %1278 = vmatprep.subr.mxu0 %v1994_v1  ;;  %1375 = vmatprep.subr.bf16.mxu1 %v2092_v10  ;;  %v217_v19 = vld [vmem:[#allocation2 + $0x58] sm:$0xff]  ;;  %v2101_v20 = vpack.c.bf16 %v212_v17, %v210_v16  ;;  %v214_v22 = vld [vmem:[#allocation2 + $0x40] sm:$0xff]  ;;  %v216_v23 = vld [vmem:[#allocation2 + $0x50] sm:$0xff] }
  0x2c   :  { %1377 = vmatpush1.bf16.msra.mxu1 %v2094_v14  ;;  %v2105_v21 = vpack.c.bf16 %v217_v19, %v215_v18  ;;  %v219_v24 = vld [vmem:[#allocation2 + $0x68] sm:$0xff]  ;;  %v221_v25 = vld [vmem:[#allocation2 + $0x78] sm:$0xff]  ;;  %v2109_v26 = vpack.c.bf16 %v216_v23, %v214_v22  ;;  %v218_v28 = vld [vmem:[#allocation2 + $0x60] sm:$0xff]  ;;  %v2180_v13 = vand.u32 127, %v67_v12 }
  0x2d   :  { %1379 = vmatprep.subr.bf16.mxu1 %v2096_v15  ;;  %v2113_v27 = vpack.c.bf16 %v221_v25, %v219_v24  ;;  %v220_v29 = vld [vmem:[#allocation2 + $0x70] sm:$0xff]  ;;  %v223_v30 = vld [vmem:[#allocation2 + $0x88] sm:$0xff]  ;;  %v225_v31 = vld [vmem:[#allocation2 + $0x98] sm:$0xff] }
  0x2e   :  { %1279 = vmatpush3.msk.msra.mxu0 %vm102_vm1, %v72_v5  ;;  %v2117_v32 = vpack.c.bf16 %v220_v29, %v218_v28  ;;  %v2121_v33 = vpack.c.bf16 %v225_v31, %v223_v30  ;;  %v222_v34 = vld [vmem:[#allocation2 + $0x80] sm:$0xff]  ;;  %v224_v35 = vld [vmem:[#allocation2 + $0x90] sm:$0xff]  ;;  %v227_v36 = vld [vmem:[#allocation2 + $0xa8] sm:$0xff]  ;;  %vm69_vm3 = vcmp.ge.s32.totalorder %v2180_v13, 96 }
  0x2f   :  { %1281 = vmatmul.mubr.msk.f32.vlgmr.msra.gmra.mrb[0].mxu0 %vm80_vm2, %v60_v6  ;;  %1439 = vmatprep.subr.bf16.mxu0 %v2092_v10  ;;  %v229_v37 = vld [vmem:[#allocation2 + $0xb8] sm:$0xff]  ;;  %v2125_v38 = vpack.c.bf16 %v224_v35, %v222_v34  ;;  %v226_v40 = vld [vmem:[#allocation2 + $0xa0] sm:$0xff]  ;;  %v228_v41 = vld [vmem:[#allocation2 + $0xb0] sm:$0xff] }
  0x30   :  { %1283 = vmatprep.mubr.msk.f32.mxu0 %vm1993_vm0, %v1994_v1  ;;  %1441 = vmatpush1.bf16.msra.mxu0 %v2094_v14  ;;  %v2129_v39 = vpack.c.bf16 %v229_v37, %v227_v36  ;;  %v231_v42 = vld [vmem:[#allocation2 + $0xc8] sm:$0xff]  ;;  %v233_v43 = vld [vmem:[#allocation2 + $0xd8] sm:$0xff]  ;;  %v2133_v44 = vpack.c.bf16 %v228_v41, %v226_v40  ;;  %v230_v46 = vld [vmem:[#allocation2 + $0xc0] sm:$0xff] }
  0x31   :  { %1443 = vmatprep.subr.bf16.mxu0 %v2096_v15  ;;  %1381 = vmatpush1.bf16.msra.mxu1 %v2101_v20  ;;  %v2137_v45 = vpack.c.bf16 %v233_v43, %v231_v42  ;;  %v232_v47 = vld [vmem:[#allocation2 + $0xd0] sm:$0xff]  ;;  %v235_v48 = vld [vmem:[#allocation2 + $0xe8] sm:$0xff]  ;;  %v237_v49 = vld [vmem:[#allocation2 + $0xf8] sm:$0xff] }
  0x32   :  { %1383 = vmatprep.subr.bf16.mxu1 %v2105_v21  ;;  %v2141_v50 = vpack.c.bf16 %v232_v47, %v230_v46  ;;  %v2145_v51 = vpack.c.bf16 %v237_v49, %v235_v48  ;;  %v234_v52 = vld [vmem:[#allocation2 + $0xe0] sm:$0xff]  ;;  %v236_v53 = vld [vmem:[#allocation2 + $0xf0] sm:$0xff]  ;;  %v239_v54 = vld [vmem:[#allocation2 + $0x108] sm:$0xff] }
  0x33   :  { %v241_v55 = vld [vmem:[#allocation2 + $0x118] sm:$0xff]  ;;  %v2149_v56 = vpack.c.bf16 %v236_v53, %v234_v52  ;;  %v238_v58 = vld [vmem:[#allocation2 + $0x100] sm:$0xff]  ;;  %v240_v59 = vld [vmem:[#allocation2 + $0x110] sm:$0xff] }
  0x34   :  { %1445 = vmatpush1.bf16.msra.mxu0 %v2101_v20  ;;  %v2153_v57 = vpack.c.bf16 %v241_v55, %v239_v54  ;;  %v243_v60 = vld [vmem:[#allocation2 + $0x128] sm:$0xff]  ;;  %v245_v61 = vld [vmem:[#allocation2 + $0x138] sm:$0xff]  ;;  %v2157_v62 = vpack.c.bf16 %v240_v59, %v238_v58  ;;  %v242_v2 = vld [vmem:[#allocation2 + $0x120] sm:$0xff] }
  0x35   :  { %1447 = vmatprep.subr.bf16.mxu0 %v2105_v21  ;;  %1385 = vmatpush1.bf16.msra.mxu1 %v2109_v26  ;;  %v2161_v63 = vpack.c.bf16 %v245_v61, %v243_v60  ;;  %v244_v3 = vld [vmem:[#allocation2 + $0x130] sm:$0xff]  ;;  %v247_v4 = vld [vmem:[#allocation2 + $0x148] sm:$0xff]  ;;  %v249_v5 = vld [vmem:[#allocation2 + $0x158] sm:$0xff] }
  0x36   :  { %1387 = vmatprep.subr.bf16.mxu1 %v2113_v27  ;;  %v2165_v6 = vpack.c.bf16 %v244_v3, %v242_v2  ;;  %v2169_v7 = vpack.c.bf16 %v249_v5, %v247_v4  ;;  %v246_v8 = vld [vmem:[#allocation2 + $0x140] sm:$0xff]  ;;  %v248_v9 = vld [vmem:[#allocation2 + $0x150] sm:$0xff]  ;;  %v251_v24 = vld [vmem:[#allocation2 + $0x168] sm:$0xff] }
  0x37   :  { %v2173_v11 = vpack.c.bf16 %v248_v9, %v246_v8  ;;  %v2185_v16 = vld [vmem:[%s2670_s2] ss:$0 sm:$0xff]  ;;  %v253_v25 = vld [vmem:[#allocation2 + $0x178] sm:$0xff]  ;;  %v252_v30 = vld [vmem:[#allocation2 + $0x170] sm:$0xff] }
  0x38   :  { %1449 = vmatpush1.bf16.msra.mxu0 %v2109_v26  ;;  %v2191_v28 = vpack.c.bf16 %v253_v25, %v251_v24  ;;  %v250_v29 = vld [vmem:[#allocation2 + $0x160] sm:$0xff]  ;;  %v255_v34 = vld [vmem:[#allocation2 + $0x188] sm:$0xff]  ;;  %v257_v35 = vld [vmem:[#allocation2 + $0x198] sm:$0xff] }
  0x39   :  { %1451 = vmatprep.subr.bf16.mxu0 %v2113_v27  ;;  %1389 = vmatpush1.bf16.msra.mxu1 %v2117_v32  ;;  %v2193_v31 = vpack.c.bf16 %v252_v30, %v250_v29  ;;  %v2199_v36 = vpack.c.bf16 %v257_v35, %v255_v34  ;;  %v254_v37 = vld [vmem:[#allocation2 + $0x180] sm:$0xff]  ;;  %v256_v40 = vld [vmem:[#allocation2 + $0x190] sm:$0xff]  ;;  %v259_v42 = vld [vmem:[#allocation2 + $0x1a8] sm:$0xff] }
  0x3a   :  { %1391 = vmatprep.subr.bf16.mxu1 %v2121_v33  ;;  %v2201_v41 = vpack.c.bf16 %v256_v40, %v254_v37  ;;  %v261_v43 = vld [vmem:[#allocation2 + $0x1b8] sm:$0xff]  ;;  %v258_v48 = vld [vmem:[#allocation2 + $0x1a0] sm:$0xff]  ;;  %v260_v49 = vld [vmem:[#allocation2 + $0x1b0] sm:$0xff] }
  0x3b   :  { %v2207_v47 = vpack.c.bf16 %v261_v43, %v259_v42  ;;  %v2209_v53 = vpack.c.bf16 %v260_v49, %v258_v48  ;;  %v263_v54 = vld [vmem:[#allocation2 + $0x1c8] sm:$0xff]  ;;  %v265_v55 = vld [vmem:[#allocation2 + $0x1d8] sm:$0xff]  ;;  %v262_v58 = vld [vmem:[#allocation2 + $0x1c0] sm:$0xff] }
  0x3c   :  { %1453 = vmatpush1.bf16.msra.mxu0 %v2117_v32  ;;  %v2212_v59 = vpack.c.bf16 %v265_v55, %v263_v54  ;;  %v264_v60 = vld [vmem:[#allocation2 + $0x1d0] sm:$0xff]  ;;  %v267_v61 = vld [vmem:[#allocation2 + $0x1e8] sm:$0xff]  ;;  %v269_v2 = vld [vmem:[#allocation2 + $0x1f8] sm:$0xff] }
  0x3d   :  { %1455 = vmatprep.subr.bf16.mxu0 %v2121_v33  ;;  %1393 = vmatpush1.bf16.msra.mxu1 %v2125_v38  ;;  %v2216_v4 = vpack.c.bf16 %v264_v60, %v262_v58  ;;  %v61_v5 = vld [vmem:[%s2668_s0 + $0x8] sm:$0xff]  ;;  %v2223_v8 = vpack.c.bf16 %v269_v2, %v267_v61  ;;  %v266_v9 = vld [vmem:[#allocation2 + $0x1e0] sm:$0xff]  ;;  %v268_v12 = vld [vmem:[#allocation2 + $0x1f0] sm:$0xff] }
  0x3e   :  { %1395 = vmatprep.subr.bf16.mxu1 %v2129_v39  ;;  %1284 = vmatmul.mubr.msk.f32.gmra.mrb[2].mxu0 %vm80_vm2, %v61_v5  ;;  %v2283_v42 = vld [vmem:[%s2672_s4] ss:$0 sm:$0xff]  ;;  %v62_v60 = vld [vmem:[%s2668_s0 + $0x10] sm:$0xff]  ;;  %v63_v61 = vld [vmem:[%s2668_s0 + $0x18] sm:$0xff] }
  0x3f   :  { %1286 = vmatprep.mubr.msk.f32.mxu0 %vm1993_vm0, %v1994_v1  ;;  %v64_v5 = vld [vmem:[%s2668_s0 + $0x20] sm:$0xff] }
  0x40   :  { %1457 = vmatpush1.bf16.msra.mxu0 %v2125_v38  ;;  %v1118_v13 = vld [vmem:[%s2675_s7] sm:$0xff] }
  0x41   :  { %1459 = vmatprep.subr.bf16.mxu0 %v2129_v39  ;;  %1397 = vmatpush1.bf16.msra.mxu1 %v2133_v44 }
  0x42   :  { %1399 = vmatprep.subr.bf16.mxu1 %v2137_v45  ;;  %1287 = vmatmul.mubr.msk.f32.gmra.mrb[4].mxu0 %vm80_vm2, %v62_v60 }
  0x43   :  { %1289 = vmatprep.mubr.msk.f32.mxu0 %vm1993_vm0, %v1994_v1 }
  0x44   :  { %1461 = vmatpush1.bf16.msra.mxu0 %v2133_v44 }
  0x45   :  { %1463 = vmatprep.subr.bf16.mxu0 %v2137_v45  ;;  %1401 = vmatpush1.bf16.msra.mxu1 %v2141_v50 }
  0x46   :  { %1403 = vmatprep.subr.bf16.mxu1 %v2145_v51  ;;  %1290 = vmatmul.mubr.msk.f32.gmra.mrb[6].mxu0 %vm80_vm2, %v63_v61 }
  0x47   :  { %1292 = vmatprep.mubr.msk.f32.mxu0 %vm1993_vm0, %v1994_v1 }
  0x48   :  { %1465 = vmatpush1.bf16.msra.mxu0 %v2141_v50 }
  0x49   :  { %1467 = vmatprep.subr.bf16.mxu0 %v2145_v51  ;;  %1405 = vmatpush1.bf16.msra.mxu1 %v2149_v56 }
  0x4a   :  { %1407 = vmatprep.subr.bf16.mxu1 %v2153_v57  ;;  %1293 = vmatmul.mubr.msk.f32.gmra.mrb[8].mxu0 %vm80_vm2, %v64_v5 }
  0x4b   :  { %1295 = vmatprep.mubr.msk.f32.mxu0 %vm1993_vm0, %v1994_v1 }
  0x4c   :  { %1469 = vmatpush1.bf16.msra.mxu0 %v2149_v56 }
  0x4d   :  { %1471 = vmatprep.subr.bf16.mxu0 %v2153_v57  ;;  %1409 = vmatpush1.bf16.msra.mxu1 %v2157_v62 }
  0x4e   :  { %1411 = vmatprep.subr.bf16.mxu1 %v2161_v63 }
  0x50   :  { %1473 = vmatpush1.bf16.msra.mxu0 %v2157_v62 }
  0x51   :  { %1475 = vmatprep.subr.bf16.mxu0 %v2161_v63  ;;  %1413 = vmatpush1.bf16.msra.mxu1 %v2165_v6 }
  0x52   :  { %1415 = vmatprep.subr.bf16.mxu1 %v2169_v7 }
  0x54   :  { %1477 = vmatpush1.bf16.msra.mxu0 %v2165_v6 }
  0x55   :  { %1479 = vmatprep.subr.bf16.mxu0 %v2169_v7  ;;  %1417 = vmatpush1.bf16.msra.mxu1 %v2173_v11 }
  0x56   :  { %1419 = vmatprep.subr.bf16.mxu1 %v2191_v28 }
  0x58   :  { %1481 = vmatpush1.bf16.msra.mxu0 %v2173_v11 }
  0x59   :  { %1483 = vmatprep.subr.bf16.mxu0 %v2191_v28  ;;  %1421 = vmatpush1.bf16.msra.mxu1 %v2193_v31 }
  0x5a   :  { %1423 = vmatprep.subr.bf16.mxu1 %v2199_v36 }
  0x5c   :  { %1485 = vmatpush1.bf16.msra.mxu0 %v2193_v31 }
  0x5d   :  { %1487 = vmatprep.subr.bf16.mxu0 %v2199_v36  ;;  %1425 = vmatpush1.bf16.msra.mxu1 %v2201_v41 }
  0x5e   :  { %1427 = vmatprep.subr.bf16.mxu1 %v2207_v47 }
  0x60   :  { %1489 = vmatpush1.bf16.msra.mxu0 %v2201_v41 }
  0x61   :  { %1491 = vmatprep.subr.bf16.mxu0 %v2207_v47  ;;  %1429 = vmatpush1.bf16.msra.mxu1 %v2209_v53 }
  0x62   :  { %1431 = vmatprep.subr.bf16.mxu1 %v2212_v59 }
  0x64   :  { %1493 = vmatpush1.bf16.msra.mxu0 %v2209_v53 }
  0x65   :  { %1495 = vmatprep.subr.bf16.mxu0 %v2212_v59  ;;  %1433 = vmatpush1.bf16.msra.mxu1 %v2216_v4 }
  0x66   :  { %1435 = vmatprep.subr.bf16.mxu1 %v2223_v8 }
  0x68   :  { %1497 = vmatpush1.bf16.msra.mxu0 %v2216_v4 }
  0x69   :  { %1499 = vmatprep.subr.bf16.mxu0 %v2223_v8 }
 0x102   :  { %v172_v17 = vpop.f32.mrb[0].mxu0 }
 0x103   :  { %v173_v18 = vadd.f32 %v2185_v16, %v172_v17  ;;  %v1282_v19 = vpop.f32.mrb[1].mxu0 }
 0x105   :  { %v271_v22 = vmul.f32 0.5, %v173_v18 }
 0x107   :  { %v272_v23 = vsel %vm69_vm3, %v173_v18, %v271_v22  ;;  %v2234_v18 = vpack.c.bf16 %v268_v12, %v266_v9 }
 0x108   :  { %1882 = vtanh.f32 %v272_v23 }
 0x109   :  { %1437 = vmatpush1.bf16.msra.mxu1 %v2234_v18  ;;  %1501 = vmatpush1.bf16.msra.mxu0 %v2234_v18 }
 0x10a   :  { %1503 = vmatprep.subr.bf16.mxu1 %v2092_v10  ;;  %1567 = vmatprep.subr.bf16.mxu0 %v2092_v10 }
 0x111   :  { %v177_v35 = vpop.f32.mrb[2].mxu0 }
 0x112   :  { %v1883_v46 = vpop.eup %1882  ;;  %v1285_v37 = vpop.f32.mrb[3].mxu0  ;;  %v178_v40 = vadd.f32 %v2185_v16, %v177_v35 }
 0x113   :  { %v274_v52 = vadd.f32 1.0, %v1883_v46 }
 0x115   :  { %v275_v3 = vmul.f32 0.5, %v274_v52 }
 0x117   :  { %v276_v17 = vsel %vm69_vm3, %v1883_v46, %v275_v3 }
 0x118   :  { %281 = vrot.lane.b32.xlu1 %v276_v17, %s1995_s24  ;;  %277 = vrot.lane.b32.xlu0 %v276_v17, %s1996_s25  ;;  %v283_v23 = vmul.f32 0.0, %v276_v17 }
 0x11c   :  { %279 = vrot.lane.b32.xlu0 %v276_v17, %s1997_s26 }
 0x18a   :  { %v278_v19 = vpop.permute.xlu0 %277  ;;  %v282_v30 = vpop.permute.xlu1 %281 }
 0x18e   :  { %v280_v22 = vpop.permute.xlu0 %279 }
 0x18f   :  { %v284_v24 = vmul.f32 %v280_v22, %v278_v19  ;;  %v65_v19 = vld [vmem:[%s2668_s0 + $0x28] sm:$0xff] }
 0x190   :  { %1296 = vmatmul.mubr.msk.f32.gmra.mrb[10].mxu0 %vm80_vm2, %v65_v19 }
 0x191   :  { %v2244_v25 = vadd.f32 %v284_v24, %v283_v23  ;;  %1298 = vmatprep.mubr.msk.f32.mxu0 %vm1993_vm0, %v1994_v1  ;;  %v66_v24 = vld [vmem:[%s2668_s0 + $0x30] sm:$0xff] }
 0x193   :  { %1884 = vtanh.f32 %v2244_v25 }
 0x194   :  { %1299 = vmatmul.mubr.msk.f32.gmra.mrb[12].mxu0 %vm80_vm2, %v66_v24 }
 0x19d   :  { %v1885_v29 = vpop.eup %1884 }
 0x19e   :  { %v287_v34 = vmul.f32 %v1885_v29, %v282_v30 }
 0x1a0   :  { %353 = vmatmul.mubr.f32.vlgmr.msra.gmra.mrb[0].mxu1 %v287_v34 }
 0x1a1   :  { %1505 = vmatpush1.bf16.msra.mxu1 %v2094_v14 }
 0x1a2   :  { %1507 = vmatprep.subr.bf16.mxu1 %v2096_v15 }
 0x1a5   :  { %1509 = vmatpush1.bf16.msra.mxu1 %v2101_v20 }
 0x1a6   :  { %1511 = vmatprep.subr.bf16.mxu1 %v2105_v21 }
 0x1a9   :  { %1513 = vmatpush1.bf16.msra.mxu1 %v2109_v26 }
 0x1aa   :  { %1515 = vmatprep.subr.bf16.mxu1 %v2113_v27 }
 0x1ad   :  { %1517 = vmatpush1.bf16.msra.mxu1 %v2117_v32 }
 0x1ae   :  { %1519 = vmatprep.subr.bf16.mxu1 %v2121_v33 }
 0x1b1   :  { %1521 = vmatpush1.bf16.msra.mxu1 %v2125_v38 }
 0x1b2   :  { %1523 = vmatprep.subr.bf16.mxu1 %v2129_v39 }
 0x1b5   :  { %1525 = vmatpush1.bf16.msra.mxu1 %v2133_v44 }
 0x1b6   :  { %1527 = vmatprep.subr.bf16.mxu1 %v2137_v45 }
 0x1b9   :  { %1529 = vmatpush1.bf16.msra.mxu1 %v2141_v50 }
 0x1ba   :  { %1531 = vmatprep.subr.bf16.mxu1 %v2145_v51 }
 0x1bd   :  { %1533 = vmatpush1.bf16.msra.mxu1 %v2149_v56 }
 0x1be   :  { %1535 = vmatprep.subr.bf16.mxu1 %v2153_v57 }
 0x1c1   :  { %1537 = vmatpush1.bf16.msra.mxu1 %v2157_v62 }
 0x1c2   :  { %1539 = vmatprep.subr.bf16.mxu1 %v2161_v63 }
 0x1c5   :  { %1541 = vmatpush1.bf16.msra.mxu1 %v2165_v6 }
 0x1c6   :  { %1543 = vmatprep.subr.bf16.mxu1 %v2169_v7 }
 0x1c9   :  { %1545 = vmatpush1.bf16.msra.mxu1 %v2173_v11 }
 0x1ca   :  { %1547 = vmatprep.subr.bf16.mxu1 %v2191_v28 }
 0x1cd   :  { %1549 = vmatpush1.bf16.msra.mxu1 %v2193_v31 }
 0x1ce   :  { %1551 = vmatprep.subr.bf16.mxu1 %v2199_v36 }
 0x1d1   :  { %1553 = vmatpush1.bf16.msra.mxu1 %v2201_v41 }
 0x1d2   :  { %1555 = vmatprep.subr.bf16.mxu1 %v2207_v47 }
 0x1d5   :  { %1557 = vmatpush1.bf16.msra.mxu1 %v2209_v53 }
 0x1d6   :  { %1559 = vmatprep.subr.bf16.mxu1 %v2212_v59 }
 0x1d9   :  { %1561 = vmatpush1.bf16.msra.mxu1 %v2216_v4 }
 0x1da   :  { %1563 = vmatprep.subr.bf16.mxu1 %v2223_v8 }
 0x1dd   :  { %1565 = vmatpush1.bf16.msra.mxu1 %v2234_v18 }
 0x1de   :  { %1631 = vmatprep.subr.bf16.mxu1 %v2092_v10 }
 0x273   :  { %v354_v43 = vpop.f32.mrb[0].mxu1 }
 0x274   :  { %v359_v46 = vadd.f32 %v354_v43, %v178_v40  ;;  %v356_v48 = vpop.f32.mrb[1].mxu1 }
 0x275   :  { %v383_v49 = vadd.f32 %v2283_v42, %v356_v48 }
 0x276   :  { %v360_v52 = vmul.f32 0.5, %v359_v46 }
 0x277   :  { %v384_v54 = vmul.f32 0.5, %v383_v49 }
 0x278   :  { %v361_v55 = vsel %vm69_vm3, %v359_v46, %v360_v52 }
 0x279   :  { %1886 = vtanh.f32 %v361_v55  ;;  %v385_v58 = vsel %vm69_vm3, %v383_v49, %v384_v54 }
 0x27a   :  { %1888 = vtanh.f32 %v385_v58 }
 0x283   :  { %v1887_v2 = vpop.eup %1886 }
 0x284   :  { %v1889_v3 = vpop.eup %1888  ;;  %v363_v12 = vadd.f32 1.0, %v1887_v2 }
 0x285   :  { %v387_v9 = vadd.f32 1.0, %v1889_v3 }
 0x286   :  { %v364_v23 = vmul.f32 0.5, %v363_v12 }
 0x287   :  { %v388_v17 = vmul.f32 0.5, %v387_v9 }
 0x288   :  { %v365_v29 = vsel %vm69_vm3, %v1887_v2, %v364_v23 }
 0x289   :  { %v389_v22 = vsel %vm69_vm3, %v1889_v3, %v388_v17  ;;  %v372_v48 = vmul.f32 %v365_v29, %v2244_v25  ;;  %v182_v25 = vpop.f32.mrb[4].mxu0 }
 0x28a   :  { %392 = vrot.lane.b32.xlu0 %v389_v22, %s1997_s26  ;;  %390 = vrot.lane.b32.xlu1 %v389_v22, %s1996_s25  ;;  %v396_v35 = vmul.f32 0.0, %v389_v22  ;;  %v1288_v3 = vpop.f32.mrb[5].mxu0 }
 0x28b   :  { %v2367_v5 = vpop.f32.mrb[6].mxu0 }
 0x28c   :  { %v1291_v9 = vpop.f32.mrb[7].mxu0 }
 0x28d   :  { %v2369_v12 = vpop.f32.mrb[8].mxu0 }
 0x28e   :  { %368 = vrot.lane.b32.xlu0 %v365_v29, %s1997_s26  ;;  %366 = vrot.lane.b32.xlu1 %v365_v29, %s1996_s25  ;;  %v1294_v17 = vpop.f32.mrb[9].mxu0 }
 0x28f   :  { %v2371_v19 = vpop.f32.mrb[10].mxu0 }
 0x292   :  { %370 = vrot.lane.b32.xlu0 %v365_v29, %s1995_s24  ;;  %394 = vrot.lane.b32.xlu1 %v389_v22, %s1995_s24  ;;  %v1297_v22 = vpop.f32.mrb[11].mxu0  ;;  %v183_v29 = vadd.f32 %v2185_v16, %v182_v25 }
 0x293   :  { %v2373_v23 = vpop.f32.mrb[12].mxu0 }
 0x294   :  { %v1300_v24 = vpop.f32.mrb[13].mxu0 }
 0x2fc   :  { %v393_v30 = vpop.permute.xlu0 %392  ;;  %v391_v34 = vpop.permute.xlu1 %390 }
 0x2fd   :  { %v397_v37 = vmul.f32 %v393_v30, %v391_v34 }
 0x2ff   :  { %v2328_v40 = vadd.f32 %v397_v37, %v396_v35 }
 0x300   :  { %v369_v43 = vpop.permute.xlu0 %368  ;;  %v367_v46 = vpop.permute.xlu1 %366 }
 0x301   :  { %1890 = vtanh.f32 %v2328_v40  ;;  %v373_v49 = vmul.f32 %v369_v43, %v367_v46 }
 0x303   :  { %v2332_v52 = vadd.f32 %v373_v49, %v372_v48 }
 0x304   :  { %v395_v55 = vpop.permute.xlu1 %394  ;;  %v371_v61 = vpop.permute.xlu0 %370 }
 0x305   :  { %1892 = vtanh.f32 %v2332_v52 }
 0x30b   :  { %v1891_v54 = vpop.eup %1890 }
 0x30c   :  { %v400_v58 = vmul.f32 %v1891_v54, %v395_v55 }
 0x30e   :  { %465 = vmatprep.mubr.f32.mxu0 %v400_v58 }
 0x30f   :  { %v1893_v60 = vpop.eup %1892 }
 0x310   :  { %v376_v2 = vmul.f32 %v1893_v60, %v371_v61 }
 0x312   :  { %466 = vmatmul.mubr.f32.vlgmr.msra.gmra.mrb[14].mxu0 %v376_v2 }
 0x313   :  { %1569 = vmatpush1.bf16.msra.mxu0 %v2094_v14 }
 0x314   :  { %1571 = vmatprep.subr.bf16.mxu0 %v2096_v15 }
 0x317   :  { %1573 = vmatpush1.bf16.msra.mxu0 %v2101_v20 }
 0x318   :  { %1575 = vmatprep.subr.bf16.mxu0 %v2105_v21 }
 0x31b   :  { %1577 = vmatpush1.bf16.msra.mxu0 %v2109_v26 }
 0x31c   :  { %1579 = vmatprep.subr.bf16.mxu0 %v2113_v27 }
 0x31f   :  { %1581 = vmatpush1.bf16.msra.mxu0 %v2117_v32 }
 0x320   :  { %1583 = vmatprep.subr.bf16.mxu0 %v2121_v33 }
 0x323   :  { %1585 = vmatpush1.bf16.msra.mxu0 %v2125_v38 }
 0x324   :  { %1587 = vmatprep.subr.bf16.mxu0 %v2129_v39 }
 0x327   :  { %1589 = vmatpush1.bf16.msra.mxu0 %v2133_v44 }
 0x328   :  { %1591 = vmatprep.subr.bf16.mxu0 %v2137_v45 }
 0x32b   :  { %1593 = vmatpush1.bf16.msra.mxu0 %v2141_v50 }
 0x32c   :  { %1595 = vmatprep.subr.bf16.mxu0 %v2145_v51 }
 0x32f   :  { %1597 = vmatpush1.bf16.msra.mxu0 %v2149_v56 }
 0x330   :  { %1599 = vmatprep.subr.bf16.mxu0 %v2153_v57 }
 0x333   :  { %1601 = vmatpush1.bf16.msra.mxu0 %v2157_v62 }
 0x334   :  { %1603 = vmatprep.subr.bf16.mxu0 %v2161_v63 }
 0x337   :  { %1605 = vmatpush1.bf16.msra.mxu0 %v2165_v6 }
 0x338   :  { %1607 = vmatprep.subr.bf16.mxu0 %v2169_v7 }
 0x33b   :  { %1609 = vmatpush1.bf16.msra.mxu0 %v2173_v11 }
 0x33c   :  { %1611 = vmatprep.subr.bf16.mxu0 %v2191_v28 }
 0x33f   :  { %1613 = vmatpush1.bf16.msra.mxu0 %v2193_v31 }
 0x340   :  { %1615 = vmatprep.subr.bf16.mxu0 %v2199_v36 }
 0x343   :  { %1617 = vmatpush1.bf16.msra.mxu0 %v2201_v41 }
 0x344   :  { %1619 = vmatprep.subr.bf16.mxu0 %v2207_v47 }
 0x347   :  { %1621 = vmatpush1.bf16.msra.mxu0 %v2209_v53 }
 0x348   :  { %1623 = vmatprep.subr.bf16.mxu0 %v2212_v59 }
 0x34b   :  { %1625 = vmatpush1.bf16.msra.mxu0 %v2216_v4 }
 0x34c   :  { %1627 = vmatprep.subr.bf16.mxu0 %v2223_v8 }
 0x34f   :  { %1629 = vmatpush1.bf16.msra.mxu0 %v2234_v18 }
 0x350   :  { %1695 = vmatprep.subr.bf16.mxu0 %v2092_v10 }
 0x3e5   :  { %v467_v30 = vpop.f32.mrb[14].mxu0 }
 0x3e6   :  { %v472_v34 = vadd.f32 %v467_v30, %v183_v29  ;;  %v469_v35 = vpop.f32.mrb[15].mxu0 }
 0x3e7   :  { %v490_v37 = vadd.f32 %v2283_v42, %v469_v35 }
 0x3e8   :  { %v473_v43 = vmul.f32 0.5, %v472_v34 }
 0x3e9   :  { %v491_v46 = vmul.f32 0.5, %v490_v37 }
 0x3ea   :  { %v474_v48 = vsel %vm69_vm3, %v472_v34, %v473_v43 }
 0x3eb   :  { %1894 = vtanh.f32 %v474_v48  ;;  %v492_v49 = vsel %vm69_vm3, %v490_v37, %v491_v46 }
 0x3ec   :  { %1896 = vtanh.f32 %v492_v49 }
 0x3f5   :  { %v1895_v54 = vpop.eup %1894 }
 0x3f6   :  { %v1897_v55 = vpop.eup %1896  ;;  %v476_v60 = vadd.f32 1.0, %v1895_v54 }
 0x3f7   :  { %v494_v58 = vadd.f32 1.0, %v1897_v55 }
 0x3f8   :  { %v477_v25 = vmul.f32 0.5, %v476_v60 }
 0x3f9   :  { %v495_v61 = vmul.f32 0.5, %v494_v58 }
 0x3fa   :  { %v478_v3 = vsel %vm69_vm3, %v1895_v54, %v477_v25 }
 0x3fb   :  { %v496_v2 = vsel %vm69_vm3, %v1897_v55, %v495_v61  ;;  %v485_v35 = vmul.f32 %v478_v3, %v2332_v52  ;;  %v188_v52 = vadd.f32 %v2185_v16, %v2367_v5 }
 0x3fc   :  { %499 = vrot.lane.b32.xlu0 %v496_v2, %s1997_s26  ;;  %497 = vrot.lane.b32.xlu1 %v496_v2, %s1996_s25  ;;  %v503_v22 = vmul.f32 %v496_v2, %v2328_v40 }
 0x400   :  { %481 = vrot.lane.b32.xlu0 %v478_v3, %s1997_s26  ;;  %479 = vrot.lane.b32.xlu1 %v478_v3, %s1996_s25 }
 0x404   :  { %483 = vrot.lane.b32.xlu0 %v478_v3, %s1995_s24  ;;  %501 = vrot.lane.b32.xlu1 %v496_v2, %s1995_s24 }
 0x46e   :  { %v500_v9 = vpop.permute.xlu0 %499  ;;  %v498_v17 = vpop.permute.xlu1 %497 }
 0x46f   :  { %v504_v24 = vmul.f32 %v500_v9, %v498_v17 }
 0x471   :  { %v2392_v29 = vadd.f32 %v504_v24, %v503_v22 }
 0x472   :  { %v482_v30 = vpop.permute.xlu0 %481  ;;  %v480_v34 = vpop.permute.xlu1 %479 }
 0x473   :  { %1898 = vtanh.f32 %v2392_v29  ;;  %v486_v37 = vmul.f32 %v482_v30, %v480_v34 }
 0x475   :  { %v2396_v43 = vadd.f32 %v486_v37, %v485_v35 }
 0x476   :  { %v502_v48 = vpop.permute.xlu1 %501  ;;  %v484_v40 = vpop.permute.xlu0 %483 }
 0x477   :  { %1900 = vtanh.f32 %v2396_v43 }
 0x47d   :  { %v1899_v46 = vpop.eup %1898 }
 0x47e   :  { %v507_v49 = vmul.f32 %v1899_v46, %v502_v48 }
 0x480   :  { %572 = vmatprep.mubr.f32.mxu1 %v507_v49 }
 0x481   :  { %v1901_v54 = vpop.eup %1900 }
 0x482   :  { %v489_v55 = vmul.f32 %v1901_v54, %v484_v40 }
 0x484   :  { %573 = vmatmul.mubr.f32.vlgmr.msra.gmra.mrb[2].mxu1 %v489_v55 }
 0x485   :  { %1633 = vmatpush1.bf16.msra.mxu1 %v2094_v14 }
 0x486   :  { %1635 = vmatprep.subr.bf16.mxu1 %v2096_v15 }
 0x489   :  { %1637 = vmatpush1.bf16.msra.mxu1 %v2101_v20 }
 0x48a   :  { %1639 = vmatprep.subr.bf16.mxu1 %v2105_v21 }
 0x48d   :  { %1641 = vmatpush1.bf16.msra.mxu1 %v2109_v26 }
 0x48e   :  { %1643 = vmatprep.subr.bf16.mxu1 %v2113_v27 }
 0x491   :  { %1645 = vmatpush1.bf16.msra.mxu1 %v2117_v32 }
 0x492   :  { %1647 = vmatprep.subr.bf16.mxu1 %v2121_v33 }
 0x495   :  { %1649 = vmatpush1.bf16.msra.mxu1 %v2125_v38 }
 0x496   :  { %1651 = vmatprep.subr.bf16.mxu1 %v2129_v39 }
 0x499   :  { %1653 = vmatpush1.bf16.msra.mxu1 %v2133_v44 }
 0x49a   :  { %1655 = vmatprep.subr.bf16.mxu1 %v2137_v45 }
 0x49d   :  { %1657 = vmatpush1.bf16.msra.mxu1 %v2141_v50 }
 0x49e   :  { %1659 = vmatprep.subr.bf16.mxu1 %v2145_v51 }
 0x4a1   :  { %1661 = vmatpush1.bf16.msra.mxu1 %v2149_v56 }
 0x4a2   :  { %1663 = vmatprep.subr.bf16.mxu1 %v2153_v57 }
 0x4a5   :  { %1665 = vmatpush1.bf16.msra.mxu1 %v2157_v62 }
 0x4a6   :  { %1667 = vmatprep.subr.bf16.mxu1 %v2161_v63 }
 0x4a9   :  { %1669 = vmatpush1.bf16.msra.mxu1 %v2165_v6 }
 0x4aa   :  { %1671 = vmatprep.subr.bf16.mxu1 %v2169_v7 }
 0x4ad   :  { %1673 = vmatpush1.bf16.msra.mxu1 %v2173_v11 }
 0x4ae   :  { %1675 = vmatprep.subr.bf16.mxu1 %v2191_v28 }
 0x4b1   :  { %1677 = vmatpush1.bf16.msra.mxu1 %v2193_v31 }
 0x4b2   :  { %1679 = vmatprep.subr.bf16.mxu1 %v2199_v36 }
 0x4b5   :  { %1681 = vmatpush1.bf16.msra.mxu1 %v2201_v41 }
 0x4b6   :  { %1683 = vmatprep.subr.bf16.mxu1 %v2207_v47 }
 0x4b9   :  { %1685 = vmatpush1.bf16.msra.mxu1 %v2209_v53 }
 0x4ba   :  { %1687 = vmatprep.subr.bf16.mxu1 %v2212_v59 }
 0x4bd   :  { %1689 = vmatpush1.bf16.msra.mxu1 %v2216_v4 }
 0x4be   :  { %1691 = vmatprep.subr.bf16.mxu1 %v2223_v8 }
 0x4c1   :  { %1693 = vmatpush1.bf16.msra.mxu1 %v2234_v18 }
 0x4c2   :  { %1759 = vmatprep.subr.bf16.mxu1 %v2092_v10 }
 0x557   :  { %v574_v58 = vpop.f32.mrb[2].mxu1 }
 0x558   :  { %v579_v60 = vadd.f32 %v574_v58, %v188_v52  ;;  %v576_v61 = vpop.f32.mrb[3].mxu1 }
 0x559   :  { %v597_v2 = vadd.f32 %v2283_v42, %v576_v61 }
 0x55a   :  { %v580_v25 = vmul.f32 0.5, %v579_v60 }
 0x55b   :  { %v598_v3 = vmul.f32 0.5, %v597_v2 }
 0x55c   :  { %v581_v9 = vsel %vm69_vm3, %v579_v60, %v580_v25 }
 0x55d   :  { %1902 = vtanh.f32 %v581_v9  ;;  %v599_v17 = vsel %vm69_vm3, %v597_v2, %v598_v3 }
 0x55e   :  { %1904 = vtanh.f32 %v599_v17 }
 0x567   :  { %v1903_v22 = vpop.eup %1902 }
 0x568   :  { %v1905_v10 = vpop.eup %1904  ;;  %v583_v30 = vadd.f32 1.0, %v1903_v22 }
 0x569   :  { %v601_v24 = vadd.f32 1.0, %v1905_v10 }
 0x56a   :  { %v584_v35 = vmul.f32 0.5, %v583_v30 }
 0x56b   :  { %v602_v5 = vmul.f32 0.5, %v601_v24 }
 0x56c   :  { %v585_v37 = vsel %vm69_vm3, %v1903_v22, %v584_v35 }
 0x56d   :  { %v603_v34 = vsel %vm69_vm3, %v1905_v10, %v602_v5  ;;  %v592_v58 = vmul.f32 %v585_v37, %v2396_v43  ;;  %v193_v43 = vadd.f32 %v2185_v16, %v2369_v12 }
 0x56e   :  { %606 = vrot.lane.b32.xlu0 %v603_v34, %s1997_s26  ;;  %604 = vrot.lane.b32.xlu1 %v603_v34, %s1996_s25  ;;  %v610_v49 = vmul.f32 %v603_v34, %v2392_v29 }
 0x572   :  { %588 = vrot.lane.b32.xlu0 %v585_v37, %s1997_s26  ;;  %586 = vrot.lane.b32.xlu1 %v585_v37, %s1996_s25 }
 0x576   :  { %590 = vrot.lane.b32.xlu0 %v585_v37, %s1995_s24  ;;  %608 = vrot.lane.b32.xlu1 %v603_v34, %s1995_s24 }
 0x5e0   :  { %v607_v46 = vpop.permute.xlu0 %606  ;;  %v605_v48 = vpop.permute.xlu1 %604 }
 0x5e1   :  { %v611_v54 = vmul.f32 %v607_v46, %v605_v48 }
 0x5e3   :  { %v2449_v40 = vadd.f32 %v611_v54, %v610_v49 }
 0x5e4   :  { %v589_v55 = vpop.permute.xlu0 %588  ;;  %v587_v52 = vpop.permute.xlu1 %586 }
 0x5e5   :  { %1906 = vtanh.f32 %v2449_v40  ;;  %v593_v60 = vmul.f32 %v589_v55, %v587_v52 }
 0x5e7   :  { %v2453_v61 = vadd.f32 %v593_v60, %v592_v58 }
 0x5e8   :  { %v609_v25 = vpop.permute.xlu1 %608  ;;  %v591_v29 = vpop.permute.xlu0 %590 }
 0x5e9   :  { %1908 = vtanh.f32 %v2453_v61 }
 0x5ef   :  { %v1907_v2 = vpop.eup %1906 }
 0x5f0   :  { %v614_v3 = vmul.f32 %v1907_v2, %v609_v25 }
 0x5f2   :  { %679 = vmatprep.mubr.f32.mxu0 %v614_v3 }
 0x5f3   :  { %v1909_v9 = vpop.eup %1908 }
 0x5f4   :  { %v596_v17 = vmul.f32 %v1909_v9, %v591_v29 }
 0x5f6   :  { %680 = vmatmul.mubr.f32.vlgmr.msra.gmra.mrb[16].mxu0 %v596_v17 }
 0x5f7   :  { %1697 = vmatpush1.bf16.msra.mxu0 %v2094_v14 }
 0x5f8   :  { %1699 = vmatprep.subr.bf16.mxu0 %v2096_v15 }
 0x5fb   :  { %1701 = vmatpush1.bf16.msra.mxu0 %v2101_v20 }
 0x5fc   :  { %1703 = vmatprep.subr.bf16.mxu0 %v2105_v21 }
 0x5ff   :  { %1705 = vmatpush1.bf16.msra.mxu0 %v2109_v26 }
 0x600   :  { %1707 = vmatprep.subr.bf16.mxu0 %v2113_v27 }
 0x603   :  { %1709 = vmatpush1.bf16.msra.mxu0 %v2117_v32 }
 0x604   :  { %1711 = vmatprep.subr.bf16.mxu0 %v2121_v33 }
 0x607   :  { %1713 = vmatpush1.bf16.msra.mxu0 %v2125_v38 }
 0x608   :  { %1715 = vmatprep.subr.bf16.mxu0 %v2129_v39 }
 0x60b   :  { %1717 = vmatpush1.bf16.msra.mxu0 %v2133_v44 }
 0x60c   :  { %1719 = vmatprep.subr.bf16.mxu0 %v2137_v45 }
 0x60f   :  { %1721 = vmatpush1.bf16.msra.mxu0 %v2141_v50 }
 0x610   :  { %1723 = vmatprep.subr.bf16.mxu0 %v2145_v51 }
 0x613   :  { %1725 = vmatpush1.bf16.msra.mxu0 %v2149_v56 }
 0x614   :  { %1727 = vmatprep.subr.bf16.mxu0 %v2153_v57 }
 0x617   :  { %1729 = vmatpush1.bf16.msra.mxu0 %v2157_v62 }
 0x618   :  { %1731 = vmatprep.subr.bf16.mxu0 %v2161_v63 }
 0x61b   :  { %1733 = vmatpush1.bf16.msra.mxu0 %v2165_v6 }
 0x61c   :  { %1735 = vmatprep.subr.bf16.mxu0 %v2169_v7 }
 0x61f   :  { %1737 = vmatpush1.bf16.msra.mxu0 %v2173_v11 }
 0x620   :  { %1739 = vmatprep.subr.bf16.mxu0 %v2191_v28 }
 0x623   :  { %1741 = vmatpush1.bf16.msra.mxu0 %v2193_v31 }
 0x624   :  { %1743 = vmatprep.subr.bf16.mxu0 %v2199_v36 }
 0x627   :  { %1745 = vmatpush1.bf16.msra.mxu0 %v2201_v41 }
 0x628   :  { %1747 = vmatprep.subr.bf16.mxu0 %v2207_v47 }
 0x62b   :  { %1749 = vmatpush1.bf16.msra.mxu0 %v2209_v53 }
 0x62c   :  { %1751 = vmatprep.subr.bf16.mxu0 %v2212_v59 }
 0x62f   :  { %1753 = vmatpush1.bf16.msra.mxu0 %v2216_v4 }
 0x630   :  { %1755 = vmatprep.subr.bf16.mxu0 %v2223_v8 }
 0x633   :  { %1757 = vmatpush1.bf16.msra.mxu0 %v2234_v18 }
 0x634   :  { %1822 = vmatprep.subr.bf16.mxu0 %v1992_v0 }
 0x6c9   :  { %v681_v22 = vpop.f32.mrb[16].mxu0 }
 0x6ca   :  { %v686_v10 = vadd.f32 %v681_v22, %v193_v43  ;;  %v683_v24 = vpop.f32.mrb[17].mxu0 }
 0x6cb   :  { %v704_v30 = vadd.f32 %v2283_v42, %v683_v24 }
 0x6cc   :  { %v687_v5 = vmul.f32 0.5, %v686_v10 }
 0x6cd   :  { %v705_v34 = vmul.f32 0.5, %v704_v30 }
 0x6ce   :  { %v688_v35 = vsel %vm69_vm3, %v686_v10, %v687_v5 }
 0x6cf   :  { %1910 = vtanh.f32 %v688_v35  ;;  %v706_v37 = vsel %vm69_vm3, %v704_v30, %v705_v34 }
 0x6d0   :  { %1912 = vtanh.f32 %v706_v37  ;;  %v203_v37 = vadd.f32 %v2185_v16, %v2373_v23 }
 0x6d9   :  { %v1911_v46 = vpop.eup %1910 }
 0x6da   :  { %v1913_v48 = vpop.eup %1912  ;;  %v690_v54 = vadd.f32 1.0, %v1911_v46 }
 0x6db   :  { %v708_v49 = vadd.f32 1.0, %v1913_v48 }
 0x6dc   :  { %v691_v52 = vmul.f32 0.5, %v690_v54 }
 0x6dd   :  { %v709_v12 = vmul.f32 0.5, %v708_v49 }
 0x6de   :  { %v692_v58 = vsel %vm69_vm3, %v1911_v46, %v691_v52 }
 0x6df   :  { %v710_v55 = vsel %vm69_vm3, %v1913_v48, %v709_v12  ;;  %v699_v43 = vmul.f32 %v692_v58, %v2453_v61 }
 0x6e0   :  { %713 = vrot.lane.b32.xlu0 %v710_v55, %s1997_s26  ;;  %711 = vrot.lane.b32.xlu1 %v710_v55, %s1996_s25  ;;  %v717_v25 = vmul.f32 %v710_v55, %v2449_v40 }
 0x6e4   :  { %695 = vrot.lane.b32.xlu0 %v692_v58, %s1997_s26  ;;  %693 = vrot.lane.b32.xlu1 %v692_v58, %s1996_s25 }
 0x6e8   :  { %697 = vrot.lane.b32.xlu0 %v692_v58, %s1995_s24  ;;  %715 = vrot.lane.b32.xlu1 %v710_v55, %s1995_s24 }
 0x752   :  { %v714_v60 = vpop.permute.xlu0 %713  ;;  %v712_v2 = vpop.permute.xlu1 %711 }
 0x753   :  { %v718_v3 = vmul.f32 %v714_v60, %v712_v2 }
 0x755   :  { %v2506_v9 = vadd.f32 %v718_v3, %v717_v25 }
 0x756   :  { %v696_v29 = vpop.permute.xlu0 %695  ;;  %v694_v17 = vpop.permute.xlu1 %693 }
 0x757   :  { %1914 = vtanh.f32 %v2506_v9  ;;  %v700_v22 = vmul.f32 %v696_v29, %v694_v17 }
 0x759   :  { %v2510_v10 = vadd.f32 %v700_v22, %v699_v43 }
 0x75a   :  { %v716_v30 = vpop.permute.xlu1 %715  ;;  %v698_v40 = vpop.permute.xlu0 %697 }
 0x75b   :  { %1916 = vtanh.f32 %v2510_v10 }
 0x761   :  { %v1915_v24 = vpop.eup %1914 }
 0x762   :  { %v721_v5 = vmul.f32 %v1915_v24, %v716_v30 }
 0x764   :  { %786 = vmatprep.mubr.f32.mxu1 %v721_v5 }
 0x765   :  { %v1917_v34 = vpop.eup %1916 }
 0x766   :  { %v703_v35 = vmul.f32 %v1917_v34, %v698_v40 }
 0x768   :  { %787 = vmatmul.mubr.f32.vlgmr.msra.gmra.mrb[4].mxu1 %v703_v35 }
 0x769   :  { %1761 = vmatpush1.bf16.msra.mxu1 %v2094_v14  ;;  %v198_v14 = vadd.f32 %v2185_v16, %v2371_v19 }
 0x76a   :  { %1763 = vmatprep.subr.bf16.mxu1 %v2096_v15 }
 0x76d   :  { %1765 = vmatpush1.bf16.msra.mxu1 %v2101_v20 }
 0x76e   :  { %1767 = vmatprep.subr.bf16.mxu1 %v2105_v21 }
 0x771   :  { %1769 = vmatpush1.bf16.msra.mxu1 %v2109_v26 }
 0x772   :  { %1771 = vmatprep.subr.bf16.mxu1 %v2113_v27 }
 0x775   :  { %1773 = vmatpush1.bf16.msra.mxu1 %v2117_v32 }
 0x776   :  { %1775 = vmatprep.subr.bf16.mxu1 %v2121_v33 }
 0x779   :  { %1777 = vmatpush1.bf16.msra.mxu1 %v2125_v38 }
 0x77a   :  { %1779 = vmatprep.subr.bf16.mxu1 %v2129_v39 }
 0x77d   :  { %1781 = vmatpush1.bf16.msra.mxu1 %v2133_v44 }
 0x77e   :  { %1783 = vmatprep.subr.bf16.mxu1 %v2137_v45 }
 0x781   :  { %1785 = vmatpush1.bf16.msra.mxu1 %v2141_v50 }
 0x782   :  { %1787 = vmatprep.subr.bf16.mxu1 %v2145_v51 }
 0x785   :  { %1789 = vmatpush1.bf16.msra.mxu1 %v2149_v56 }
 0x786   :  { %1791 = vmatprep.subr.bf16.mxu1 %v2153_v57 }
 0x789   :  { %1793 = vmatpush1.bf16.msra.mxu1 %v2157_v62 }
 0x78a   :  { %1795 = vmatprep.subr.bf16.mxu1 %v2161_v63 }
 0x78d   :  { %1797 = vmatpush1.bf16.msra.mxu1 %v2165_v6 }
 0x78e   :  { %1799 = vmatprep.subr.bf16.mxu1 %v2169_v7 }
 0x791   :  { %1801 = vmatpush1.bf16.msra.mxu1 %v2173_v11 }
 0x792   :  { %1803 = vmatprep.subr.bf16.mxu1 %v2191_v28 }
 0x795   :  { %1805 = vmatpush1.bf16.msra.mxu1 %v2193_v31 }
 0x796   :  { %1807 = vmatprep.subr.bf16.mxu1 %v2199_v36 }
 0x799   :  { %1809 = vmatpush1.bf16.msra.mxu1 %v2201_v41 }
 0x79a   :  { %1811 = vmatprep.subr.bf16.mxu1 %v2207_v47 }
 0x79d   :  { %1813 = vmatpush1.bf16.msra.mxu1 %v2209_v53 }
 0x79e   :  { %1815 = vmatprep.subr.bf16.mxu1 %v2212_v59 }
 0x7a1   :  { %1817 = vmatpush1.bf16.msra.mxu1 %v2216_v4 }
 0x7a2   :  { %1819 = vmatprep.subr.bf16.mxu1 %v2223_v8 }
 0x7a5   :  { %1821 = vmatpush1.bf16.msra.mxu1 %v2234_v18 }
 0x83b   :  { %v788_v15 = vpop.f32.mrb[4].mxu1 }
 0x83c   :  { %v793_v20 = vadd.f32 %v788_v15, %v198_v14  ;;  %v790_v21 = vpop.f32.mrb[5].mxu1 }
 0x83d   :  { %v811_v26 = vadd.f32 %v2283_v42, %v790_v21 }
 0x83e   :  { %v794_v27 = vmul.f32 0.5, %v793_v20 }
 0x83f   :  { %v812_v32 = vmul.f32 0.5, %v811_v26 }
 0x840   :  { %v795_v33 = vsel %vm69_vm3, %v793_v20, %v794_v27 }
 0x841   :  { %1918 = vtanh.f32 %v795_v33  ;;  %v813_v38 = vsel %vm69_vm3, %v811_v26, %v812_v32  ;;  %v1024_v32 = vld [vmem:[#allocation4] sm:$0xff]  ;;  %v1025_v33 = vld [vmem:[#allocation4 + $0x8] sm:$0xff] }
 0x842   :  { %1920 = vtanh.f32 %v813_v38  ;;  %v1026_v38 = vld [vmem:[#allocation4 + $0x10] sm:$0xff] }
 0x84b   :  { %v1919_v39 = vpop.eup %1918 }
 0x84c   :  { %v1921_v44 = vpop.eup %1920  ;;  %v797_v50 = vadd.f32 1.0, %v1919_v39 }
 0x84d   :  { %v815_v45 = vadd.f32 1.0, %v1921_v44 }
 0x84e   :  { %v798_v57 = vmul.f32 0.5, %v797_v50  ;;  %v1028_v50 = vld [vmem:[#allocation4 + $0x20] sm:$0xff] }
 0x84f   :  { %v816_v51 = vmul.f32 0.5, %v815_v45 }
 0x850   :  { %v799_v62 = vsel %vm69_vm3, %v1919_v39, %v798_v57  ;;  %v1823_v39 = vpack.c.bf16 %v1025_v33, %v1024_v32  ;;  %v1030_v57 = vld [vmem:[#allocation4 + $0x30] sm:$0xff]  ;;  %v1133_v32 = vld [vmem:[%s2675_s7 + $0x78] sm:$0xff] }
 0x851   :  { %v817_v56 = vsel %vm69_vm3, %v1921_v44, %v816_v51  ;;  %v806_v41 = vmul.f32 %v799_v62, %v2510_v10  ;;  %v1027_v44 = vld [vmem:[#allocation4 + $0x18] sm:$0xff]  ;;  %v1029_v51 = vld [vmem:[#allocation4 + $0x28] sm:$0xff] }
 0x852   :  { %820 = vrot.lane.b32.xlu0 %v817_v56, %s1997_s26  ;;  %818 = vrot.lane.b32.xlu1 %v817_v56, %s1996_s25  ;;  %v824_v7 = vmul.f32 %v817_v56, %v2506_v9  ;;  %v1826_v45 = vpack.c.bf16 %v1027_v44, %v1026_v38  ;;  %v1228_v38 = vld [vmem:[%s2674_s6] ss:$0 sm:$0xff] }
 0x856   :  { %802 = vrot.lane.b32.xlu0 %v799_v62, %s1997_s26  ;;  %800 = vrot.lane.b32.xlu1 %v799_v62, %s1996_s25 }
 0x85a   :  { %804 = vrot.lane.b32.xlu0 %v799_v62, %s1995_s24  ;;  %822 = vrot.lane.b32.xlu1 %v817_v56, %s1995_s24  ;;  %v1829_v56 = vpack.c.bf16 %v1029_v51, %v1028_v50  ;;  %v1031_v62 = vld [vmem:[#allocation4 + $0x38] sm:$0xff] }
 0x8c4   :  { %v821_v63 = vpop.permute.xlu0 %820  ;;  %v819_v6 = vpop.permute.xlu1 %818 }
 0x8c5   :  { %v825_v11 = vmul.f32 %v821_v63, %v819_v6  ;;  %v1832_v63 = vpack.c.bf16 %v1031_v62, %v1030_v57 }
 0x8c7   :  { %v826_v28 = vadd.f32 %v825_v11, %v824_v7 }
 0x8c8   :  { %v803_v31 = vpop.permute.xlu0 %802  ;;  %v801_v36 = vpop.permute.xlu1 %800 }
 0x8c9   :  { %1922 = vtanh.f32 %v826_v28  ;;  %v807_v47 = vmul.f32 %v803_v31, %v801_v36  ;;  %v1032_v36 = vld [vmem:[#allocation4 + $0x40] sm:$0xff] }
 0x8cb   :  { %v808_v53 = vadd.f32 %v807_v47, %v806_v41  ;;  %v1033_v41 = vld [vmem:[#allocation4 + $0x48] sm:$0xff] }
 0x8cc   :  { %v823_v4 = vpop.permute.xlu1 %822  ;;  %v805_v19 = vpop.permute.xlu0 %804  ;;  %v1835_v47 = vpack.c.bf16 %v1033_v41, %v1032_v36 }
 0x8cd   :  { %1924 = vtanh.f32 %v808_v53 }
 0x8d3   :  { %v1923_v59 = vpop.eup %1922 }
 0x8d4   :  { %v828_v8 = vmul.f32 %v1923_v59, %v823_v4  ;;  %v1035_v59 = vld [vmem:[#allocation4 + $0x58] sm:$0xff] }
 0x8d6   :  { %893 = vmatprep.mubr.f32.mxu0 %v828_v8 }
 0x8d7   :  { %v1925_v18 = vpop.eup %1924 }
 0x8d8   :  { %v810_v61 = vmul.f32 %v1925_v18, %v805_v19  ;;  %v1036_v18 = vld [vmem:[#allocation4 + $0x60] sm:$0xff] }
 0x8da   :  { %894 = vmatmul.mubr.f32.vlgmr.msra.gmra.mrb[18].mxu0 %v810_v61 }
 0x8db   :  { %1333 = vmatprep.mubr.msk.f32.mxu0 %vm1993_vm0, %v1994_v1  ;;  %1824 = vmatpush3.bf16.msra.mxu0 %v1823_v39 }
 0x8dc   :  { %1825 = vmatprep.subr.bf16.mxu0 %v1992_v0 }
 0x8df   :  { %1827 = vmatpush3.bf16.msra.mxu0 %v1826_v45 }
 0x8e0   :  { %1828 = vmatprep.subr.bf16.mxu0 %v1992_v0 }
 0x8e3   :  { %1830 = vmatpush3.bf16.msra.mxu0 %v1829_v56 }
 0x8e4   :  { %1831 = vmatprep.subr.bf16.mxu0 %v1992_v0 }
 0x8e7   :  { %1833 = vmatpush3.bf16.msra.mxu0 %v1832_v63 }
 0x8e8   :  { %1834 = vmatprep.subr.bf16.mxu0 %v1992_v0 }
 0x8eb   :  { %1836 = vmatpush3.bf16.msra.mxu0 %v1835_v47 }
 0x8ec   :  { %1837 = vmatprep.subr.bf16.mxu0 %v1992_v0 }
 0x9ad   :  { %v895_v46 = vpop.f32.mrb[18].mxu0 }
 0x9ae   :  { %v900_v48 = vadd.f32 %v895_v46, %v203_v37  ;;  %v897_v49 = vpop.f32.mrb[19].mxu0  ;;  %v1038_v46 = vld [vmem:[#allocation4 + $0x70] sm:$0xff] }
 0x9af   :  { %v918_v54 = vadd.f32 %v2283_v42, %v897_v49 }
 0x9b0   :  { %v901_v12 = vmul.f32 0.5, %v900_v48 }
 0x9b1   :  { %v919_v55 = vmul.f32 0.5, %v918_v54 }
 0x9b2   :  { %v902_v52 = vsel %vm69_vm3, %v900_v48, %v901_v12  ;;  %v1039_v48 = vld [vmem:[#allocation4 + $0x78] sm:$0xff] }
 0x9b3   :  { %1926 = vtanh.f32 %v902_v52  ;;  %v920_v58 = vsel %vm69_vm3, %v918_v54, %v919_v55  ;;  %v1844_v54 = vpack.c.bf16 %v1039_v48, %v1038_v46 }
 0x9b4   :  { %1928 = vtanh.f32 %v920_v58 }
 0x9bd   :  { %v1927_v60 = vpop.eup %1926 }
 0x9be   :  { %v1929_v2 = vpop.eup %1928  ;;  %v904_v3 = vadd.f32 1.0, %v1927_v60 }
 0x9bf   :  { %v922_v25 = vadd.f32 1.0, %v1929_v2 }
 0x9c0   :  { %v905_v9 = vmul.f32 0.5, %v904_v3 }
 0x9c1   :  { %v923_v16 = vmul.f32 0.5, %v922_v25 }
 0x9c2   :  { %v906_v29 = vsel %vm69_vm3, %v1927_v60, %v905_v9  ;;  %v1120_v9 = vld [vmem:[%s2675_s7 + $0x10] sm:$0xff] }
 0x9c3   :  { %v924_v23 = vsel %vm69_vm3, %v1929_v2, %v923_v16  ;;  %v913_v34 = vmul.f32 %v906_v29, %v808_v53  ;;  %v1034_v53 = vld [vmem:[#allocation4 + $0x50] sm:$0xff]  ;;  %v1119_v2 = vld [vmem:[%s2675_s7 + $0x8] sm:$0xff] }
 0x9c4   :  { %927 = vrot.lane.b32.xlu0 %v924_v23, %s1997_s26  ;;  %925 = vrot.lane.b32.xlu1 %v924_v23, %s1996_s25  ;;  %v931_v22 = vmul.f32 %v924_v23, %v826_v28  ;;  %v1838_v4 = vpack.c.bf16 %v1035_v59, %v1034_v53  ;;  %v1847_v16 = vpack.c.bf16 %v1119_v2, %v1118_v13 }
 0x9c6   :  { %1839 = vmatpush3.bf16.msra.mxu0 %v1838_v4 }
 0x9c7   :  { %1840 = vmatprep.subr.bf16.mxu0 %v1992_v0 }
 0x9c8   :  { %909 = vrot.lane.b32.xlu0 %v906_v29, %s1997_s26  ;;  %907 = vrot.lane.b32.xlu1 %v906_v29, %s1996_s25 }
 0x9cc   :  { %911 = vrot.lane.b32.xlu0 %v906_v29, %s1995_s24  ;;  %929 = vrot.lane.b32.xlu1 %v924_v23, %s1995_s24  ;;  %v1121_v29 = vld [vmem:[%s2675_s7 + $0x18] sm:$0xff] }
 0xa36   :  { %v928_v17 = vpop.permute.xlu0 %927  ;;  %v926_v43 = vpop.permute.xlu1 %925 }
 0xa37   :  { %v932_v10 = vmul.f32 %v928_v17, %v926_v43  ;;  %v1850_v17 = vpack.c.bf16 %v1121_v29, %v1120_v9  ;;  %v1122_v43 = vld [vmem:[%s2675_s7 + $0x20] sm:$0xff] }
 0xa39   :  { %v2582_v24 = vadd.f32 %v932_v10, %v931_v22  ;;  %v1123_v22 = vld [vmem:[%s2675_s7 + $0x28] sm:$0xff] }
 0xa3a   :  { %v910_v30 = vpop.permute.xlu0 %909  ;;  %v908_v5 = vpop.permute.xlu1 %907  ;;  %v1853_v10 = vpack.c.bf16 %v1123_v22, %v1122_v43 }
 0xa3b   :  { %1930 = vtanh.f32 %v2582_v24  ;;  %v914_v40 = vmul.f32 %v910_v30, %v908_v5  ;;  %v1126_v5 = vld [vmem:[%s2675_s7 + $0x40] sm:$0xff] }
 0xa3d   :  { %v915_v35 = vadd.f32 %v914_v40, %v913_v34  ;;  %v1127_v34 = vld [vmem:[%s2675_s7 + $0x48] sm:$0xff] }
 0xa3e   :  { %v930_v15 = vpop.permute.xlu1 %929  ;;  %v912_v26 = vpop.permute.xlu0 %911  ;;  %v1859_v40 = vpack.c.bf16 %v1127_v34, %v1126_v5 }
 0xa3f   :  { %1932 = vtanh.f32 %v915_v35  ;;  %v1128_v35 = vld [vmem:[%s2675_s7 + $0x50] sm:$0xff] }
 0xa45   :  { %v1931_v14 = vpop.eup %1930 }
 0xa46   :  { %v935_v20 = vmul.f32 %v1931_v14, %v930_v15  ;;  %v1129_v14 = vld [vmem:[%s2675_s7 + $0x58] sm:$0xff] }
 0xa47   :  { %v1862_v15 = vpack.c.bf16 %v1129_v14, %v1128_v35 }
 0xa48   :  { %1000 = vmatprep.mubr.f32.mxu1 %v935_v20  ;;  %v1130_v20 = vld [vmem:[%s2675_s7 + $0x60] sm:$0xff] }
 0xa49   :  { %v1933_v21 = vpop.eup %1932 }
 0xa4a   :  { %v917_v27 = vmul.f32 %v1933_v21, %v912_v26  ;;  %v1131_v21 = vld [vmem:[%s2675_s7 + $0x68] sm:$0xff] }
 0xa4b   :  { %v1865_v26 = vpack.c.bf16 %v1131_v21, %v1130_v20 }
 0xa4c   :  { %1001 = vmatmul.mubr.f32.vlgmr.msra.gmra.mrb[6].mxu1 %v917_v27  ;;  %v1132_v27 = vld [vmem:[%s2675_s7 + $0x70] sm:$0xff] }
 0xa4d   :  { %v1868_v33 = vpack.c.bf16 %v1133_v32, %v1132_v27 }
 0xb1f   :  { %v1002_v6 = vpop.f32.mrb[6].mxu1 }
 0xb20   :  { %v1003_v7 = vpop.f32.mrb[7].mxu1 }
 0xb21   :  { %v1006_v11 = vadd.f32 %v2283_v42, %v1003_v7  ;;  %v1037_v42 = vld [vmem:[#allocation4 + $0x68] sm:$0xff] }
 0xb22   :  { %v1841_v61 = vpack.c.bf16 %v1037_v42, %v1036_v18 }
 0xb23   :  { %v1007_v28 = vmul.f32 0.5, %v1006_v11 }
 0xb24   :  { %1842 = vmatpush3.bf16.msra.mxu0 %v1841_v61 }
 0xb25   :  { %v1008_v31 = vsel %vm69_vm3, %v1006_v11, %v1007_v28  ;;  %1843 = vmatprep.subr.bf16.mxu0 %v1992_v0 }
 0xb26   :  { %1934 = vtanh.f32 %v1008_v31 }
 0xb28   :  { %1845 = vmatpush3.bf16.msra.mxu0 %v1844_v54 }
 0xb29   :  { %1846 = vmatprep.subr.bf16.mxu0 %v1992_v0 }
 0xb30   :  { %v1935_v8 = vpop.eup %1934 }
 0xb31   :  { %v1010_v19 = vadd.f32 1.0, %v1935_v8 }
 0xb33   :  { %v1011_v37 = vmul.f32 0.5, %v1010_v19 }
 0xb35   :  { %v1012_v49 = vsel %vm69_vm3, %v1935_v8, %v1011_v37 }
 0xb36   :  { %1015 = vrot.lane.b32.xlu0 %v1012_v49, %s1997_s26  ;;  %1013 = vrot.lane.b32.xlu1 %v1012_v49, %s1996_s25  ;;  %v1019_v52 = vmul.f32 %v1012_v49, %v2582_v24  ;;  %v1124_v24 = vld [vmem:[%s2675_s7 + $0x30] sm:$0xff] }
 0xb3a   :  { %1017 = vrot.lane.b32.xlu1 %v1012_v49, %s1995_s24 }
 0xba8   :  { %v1016_v12 = vpop.permute.xlu0 %1015  ;;  %v1014_v55 = vpop.permute.xlu1 %1013 }
 0xba9   :  { %v1020_v58 = vmul.f32 %v1016_v12, %v1014_v55 }
 0xbab   :  { %v1021_v60 = vadd.f32 %v1020_v58, %v1019_v52 }
 0xbac   :  { %v1018_v3 = vpop.permute.xlu1 %1017 }
 0xbad   :  { %1936 = vtanh.f32 %v1021_v60 }
 0xbb7   :  { %v1937_v25 = vpop.eup %1936 }
 0xbb8   :  { %v1023_v23 = vmul.f32 %v1937_v25, %v1018_v3 }
 0xbba   :  { %1334 = vmatmul.mubr.f32.vlgmr.msra.gmra.mrb[20].mxu0 %v1023_v23 }
 0xbbb   :  { %1848 = vmatpush3.bf16.msra.mxu0 %v1847_v16  ;;  %1368 = vmatprep.mubr.msk.f32.mxu0 %vm1993_vm0, %v1994_v1  ;;  %v1125_v1 = vld [vmem:[%s2675_s7 + $0x38] sm:$0xff] }
 0xbbc   :  { %1849 = vmatprep.subr.bf16.mxu0 %v1992_v0  ;;  %v1856_v30 = vpack.c.bf16 %v1125_v1, %v1124_v24 }
 0xbbf   :  { %1851 = vmatpush3.bf16.msra.mxu0 %v1850_v17 }
 0xbc0   :  { %1852 = vmatprep.subr.bf16.mxu0 %v1992_v0 }
 0xbc3   :  { %1854 = vmatpush3.bf16.msra.mxu0 %v1853_v10 }
 0xbc4   :  { %1855 = vmatprep.subr.bf16.mxu0 %v1992_v0 }
 0xbc7   :  { %1857 = vmatpush3.bf16.msra.mxu0 %v1856_v30 }
 0xbc8   :  { %1858 = vmatprep.subr.bf16.mxu0 %v1992_v0 }
 0xbcb   :  { %1860 = vmatpush3.bf16.msra.mxu0 %v1859_v40 }
 0xbcc   :  { %1861 = vmatprep.subr.bf16.mxu0 %v1992_v0 }
 0xbcf   :  { %1863 = vmatpush3.bf16.msra.mxu0 %v1862_v15 }
 0xbd0   :  { %1864 = vmatprep.subr.bf16.mxu0 %v1992_v0 }
 0xbd3   :  { %1866 = vmatpush3.bf16.msra.mxu0 %v1865_v26 }
 0xbd4   :  { %1867 = vmatprep.subr.bf16.mxu0 %v1992_v0  ;;  %v1229_v0 = vld [vmem:[%s2676_s8] ss:$0 sm:$0xff] }
 0xbd7   :  { %1869 = vmatpush3.bf16.msra.mxu0 %v1868_v33 }
 0xc8d   :  { %v1113_v39 = vpop.f32.mrb[20].mxu0 }
 0xc8e   :  { %v1114_v44 = vadd.f32 %v1228_v38, %v1113_v39  ;;  %v1335_v45 = vpop.f32.mrb[21].mxu0 }
 0xc90   :  { %v1117_v50 = vmax.f32 %v1114_v44, 0.0 }
 0xc92   :  { %1369 = vmatmul.mubr.f32.vlgmr.msra.gmra.mrb[22].mxu0 %v1117_v50 }
 0xd65   :  { %v1207_v51 = vpop.f32.mrb[22].mxu0 }
 0xd66   :  { %v1208_v56 = vadd.f32 %v1229_v0, %v1207_v51  ;;  %v1370_v57 = vpop.f32.mrb[23].mxu0 }
 0xd68   :  { %1211 = vst [vmem:[%s2677_s9] sm:$0xff] %v1208_v56 }
 0xd69   :  { %1216 = vsyncpa [#allocation3], 1 }
 0xd6a   :  { %1217 = vsyncpa [#allocation5], 1 }

</bundles_post_ra>
